<compile_context>
chip_gen: v7x
topology: tpu7x:2x2x1
jax: 0.10.0
libtpu: 0.0.40
codegen_flags: <defaults>
</compile_context>

<pallas_src>
import functools
import math

import jax
import jax.numpy as jnp
from jax.experimental import pallas as pl
from jax.experimental.pallas import tpu as pltpu

FEAT_DIM = 256        # must equal PositionalEncoding features_dim=256
D_K = 64
D_V = 64
D_FF = 512
N_HEADS = 4
N_LANG = 3
N_BLOCKS = 4
BN_EPS = 1e-5
LN_EPS = 1e-5
BN_SCALE = 1.0 / math.sqrt(1.0 + BN_EPS)   # eval-mode BatchNorm1d(affine=False)

F_RAW = 99            # raw frame feature width
F_PAD = 128           # padded (lane-aligned) frame feature width
HID1 = 1536
HID2 = 3000
HID2_PAD = 3072       # 3000 padded to a multiple of 128
OUT_PAD = 128         # n_lang padded to a full lane width


def _round_up(a, b):
    return (a + b - 1) // b * b


# ----------------------------------------------------------------------------
# Kernel 1: frame-level MLP + softmax attention pooling over groups of 10
#   x block   : (10, TG, 128)  -- frame-major, TG groups per grid step
#   weights   : 128x128 bf16 (zero padded), l3 column replicated across lanes
#   output    : (TG, 128) pooled features (lane-dense)
# ----------------------------------------------------------------------------
def _pool_kernel(x_ref, w1_ref, b1_ref, w2_ref, b2_ref, w3_ref, b3_ref, o_ref):
    w1 = w1_ref[...]
    w2 = w2_ref[...]
    w3 = w3_ref[...]
    b1 = b1_ref[...]
    b2 = b2_ref[...]
    b3 = b3_ref[...]

    h2s = []
    ss = []
    for f in range(10):                                      # static unroll over frames
        xf = x_ref[f].astype(jnp.bfloat16)                   # (TG, 128)
        h1 = jnp.maximum(
            jnp.dot(xf, w1, preferred_element_type=jnp.float32) + b1, 0.0)
        h2 = jnp.maximum(
            jnp.dot(h1.astype(jnp.bfloat16), w2,
                    preferred_element_type=jnp.float32) + b2, 0.0)
        s = jnp.maximum(
            jnp.dot(h2.astype(jnp.bfloat16), w3,
                    preferred_element_type=jnp.float32) + b3, 0.0)
        h2s.append(h2)
        ss.append(s)

    # Softmax over the 10 frames of each group (per group / per lane; the
    # scoring column is lane-replicated so every lane carries the same weight).
    m = ss[0]
    for s in ss[1:]:
        m = jnp.maximum(m, s)
    es = [jnp.exp(s - m) for s in ss]
    denom = es[0]
    for e in es[1:]:
        denom = denom + e
    num = h2s[0] * es[0]
    for h2, e in zip(h2s[1:], es[1:]):
        num = num + h2 * e
    o_ref[...] = (num * pl.reciprocal(denom, approx=True)).astype(o_ref.dtype)


def attention_pool(x_fr, kp, tg):
    """x_fr: (10, Gp, 128) f32 frame-major input -> (Gp, 128) pooled."""
    _, gp, _ = x_fr.shape
    return pl.pallas_call(
        _pool_kernel,
        out_shape=jax.ShapeDtypeStruct((gp, F_PAD), jnp.float32),
        grid=(gp // tg,),
        in_specs=[
            pl.BlockSpec((10, tg, F_PAD), lambda i: (0, i, 0)),
            pl.BlockSpec((F_PAD, F_PAD), lambda i: (0, 0)),
            pl.BlockSpec((1, F_PAD), lambda i: (0, 0)),
            pl.BlockSpec((F_PAD, F_PAD), lambda i: (0, 0)),
            pl.BlockSpec((1, F_PAD), lambda i: (0, 0)),
            pl.BlockSpec((F_PAD, F_PAD), lambda i: (0, 0)),
            pl.BlockSpec((1, F_PAD), lambda i: (0, 0)),
        ],
        out_specs=pl.BlockSpec((tg, F_PAD), lambda i: (i, 0)),
        compiler_params=pltpu.CompilerParams(
            dimension_semantics=("parallel",)),
    )(x_fr, kp["pw1"], kp["pb1"], kp["pw2"], kp["pb2"], kp["pw3"], kp["pb3"])


# ----------------------------------------------------------------------------
# Kernel 2: fused segment MLP
#   linear4 -> relu -> fc1 -> relu -> bn1 -> fc2 (embedding)
#   relu -> bn2 -> fc3 -> relu -> bn3 -> fc4 (cnn_output)
# Weights are VMEM-resident bf16; grid tiles the row (segment) dimension.
# ----------------------------------------------------------------------------
def _mlp_kernel(x_ref, l4w_ref, l4b_ref, f1w_ref, f1b_ref, f2w_ref, f2b_ref,
                f3w_ref, f3b_ref, f4w_ref, f4b_ref, emb_ref, cnn_ref):
    x = x_ref[...].astype(jnp.bfloat16)                                   # (R, 128)
    h = jnp.dot(x, l4w_ref[...], preferred_element_type=jnp.float32) + l4b_ref[...]
    h = jnp.maximum(h, 0.0)                                               # relu(linear4)
    h = jnp.dot(h.astype(jnp.bfloat16), f1w_ref[...],
                preferred_element_type=jnp.float32) + f1b_ref[...]
    h = jnp.maximum(h, 0.0) * BN_SCALE                                    # bn1(relu(fc1))
    emb = jnp.dot(h.astype(jnp.bfloat16), f2w_ref[...],
                  preferred_element_type=jnp.float32) + f2b_ref[...]      # fc2
    emb_ref[...] = emb.astype(emb_ref.dtype)

    t = jnp.maximum(emb, 0.0) * BN_SCALE                                  # bn2(relu(emb)), dropout=id
    t = jnp.dot(t.astype(jnp.bfloat16), f3w_ref[...],
                preferred_element_type=jnp.float32) + f3b_ref[...]
    t = jnp.maximum(t, 0.0) * BN_SCALE                                    # bn3(relu(fc3))
    cnn = jnp.dot(t.astype(jnp.bfloat16), f4w_ref[...],
                  preferred_element_type=jnp.float32) + f4b_ref[...]      # fc4 (padded to 128)
    cnn_ref[...] = cnn.astype(cnn_ref.dtype)


def mlp_chain(pooled, kp, r):
    gp = pooled.shape[0]
    c2 = lambda i: (0, 0)
    return pl.pallas_call(
        _mlp_kernel,
        out_shape=(jax.ShapeDtypeStruct((gp, FEAT_DIM), jnp.float32),
                   jax.ShapeDtypeStruct((gp, OUT_PAD), jnp.float32)),
        grid=(gp // r,),
        in_specs=[
            pl.BlockSpec((r, F_PAD), lambda i: (i, 0)),
            pl.BlockSpec((F_PAD, HID1), c2),
            pl.BlockSpec((1, HID1), c2),
            pl.BlockSpec((HID1, HID2_PAD), c2),
            pl.BlockSpec((1, HID2_PAD), c2),
            pl.BlockSpec((HID2_PAD, FEAT_DIM), c2),
            pl.BlockSpec((1, FEAT_DIM), c2),
            pl.BlockSpec((FEAT_DIM, FEAT_DIM), c2),
            pl.BlockSpec((1, FEAT_DIM), c2),
            pl.BlockSpec((FEAT_DIM, OUT_PAD), c2),
            pl.BlockSpec((1, OUT_PAD), c2),
        ],
        out_specs=(pl.BlockSpec((r, FEAT_DIM), lambda i: (i, 0)),
                   pl.BlockSpec((r, OUT_PAD), lambda i: (i, 0))),
        compiler_params=pltpu.CompilerParams(
            dimension_semantics=("parallel",),
            vmem_limit_bytes=48 * 1024 * 1024),
    )(pooled, kp["l4_w"], kp["l4_b"], kp["fc1_w"], kp["fc1_b"],
      kp["fc2_w"], kp["fc2_b"], kp["fc3_w"], kp["fc3_b"],
      kp["fc4_w"], kp["fc4_b"])


# ----------------------------------------------------------------------------
# Kernel 3: fused transformer path (per batch element)
#   LN1 -> +PE -> LN2 -> 4x [fused-QKV MHA + FFN, post-LN] -> output_fc -> sigmoid
# ----------------------------------------------------------------------------
def _ln(x, g, b):
    mu = jnp.mean(x, axis=-1, keepdims=True)
    var = jnp.mean(jnp.square(x - mu), axis=-1, keepdims=True)
    return (x - mu) * jax.lax.rsqrt(var + LN_EPS) * g + b


def _transformer_kernel(x_ref, mask_ref, pe_ref, pre_ln_ref,
                        wqkv_ref, bqkv_ref, wo_ref, bo_ref, ln_a_ref,
                        wf1_ref, bf1_ref, wf2_ref, bf2_ref, ln_f_ref,
                        wout_ref, bout_ref, o_ref, ctx_scratch,
                        *, n_blocks, n_heads, d_k, d_v):
    pre = pre_ln_ref[...]                                                 # (4, D)
    x = x_ref[...]                                                        # (L, D) f32
    mask = mask_ref[...]                                                  # (L, L) additive

    x = _ln(x, pre[0:1, :], pre[1:2, :])                                  # layernorm1
    x = x + pe_ref[...]                                                   # + positional enc.
    x = _ln(x, pre[2:3, :], pre[3:4, :])                                  # layernorm2

    inv_sqrt_dk = 1.0 / math.sqrt(d_k)
    k_off = n_heads * d_k
    v_off = 2 * n_heads * d_k

    for blk in range(n_blocks):                                           # static unroll
        qkv = jnp.dot(x.astype(jnp.bfloat16), wqkv_ref[blk],
                      preferred_element_type=jnp.float32) + bqkv_ref[blk]  # (L, 3*H*dk)
        for h in range(n_heads):
            qh = qkv[:, h * d_k:(h + 1) * d_k]
            kh = qkv[:, k_off + h * d_k: k_off + (h + 1) * d_k]
            vh = qkv[:, v_off + h * d_v: v_off + (h + 1) * d_v]
            s = jax.lax.dot_general(qh.astype(jnp.bfloat16), kh.astype(jnp.bfloat16),
                                    (((1,), (1,)), ((), ())),
                                    preferred_element_type=jnp.float32)    # (L, L)
            s = s * inv_sqrt_dk + mask
            s = s - jnp.max(s, axis=-1, keepdims=True)
            p = jnp.exp(s)
            p = p * pl.reciprocal(jnp.sum(p, axis=-1, keepdims=True), approx=True)
            ctx = jnp.dot(p.astype(jnp.bfloat16), vh.astype(jnp.bfloat16),
                          preferred_element_type=jnp.float32)              # (L, d_v)
            ctx_scratch[:, h * d_v:(h + 1) * d_v] = ctx
        attn = jnp.dot(ctx_scratch[...].astype(jnp.bfloat16), wo_ref[blk],
                       preferred_element_type=jnp.float32) + bo_ref[blk]   # single K=256 proj
        ln_a = ln_a_ref[blk]
        x = _ln(x + attn, ln_a[0:1, :], ln_a[1:2, :])

        ff = jnp.dot(x.astype(jnp.bfloat16), wf1_ref[blk],
                     preferred_element_type=jnp.float32) + bf1_ref[blk]
        ff = jnp.maximum(ff, 0.0)
        ff = jnp.dot(ff.astype(jnp.bfloat16), wf2_ref[blk],
                     preferred_element_type=jnp.float32) + bf2_ref[blk]
        ln_f = ln_f_ref[blk]
        x = _ln(x + ff, ln_f[0:1, :], ln_f[1:2, :])

    logits = jnp.dot(x.astype(jnp.bfloat16), wout_ref[...],
                     preferred_element_type=jnp.float32) + bout_ref[...]   # (L, 128)
    o_ref[...] = jax.nn.sigmoid(logits).astype(o_ref.dtype)


def transformer(emb, mask, pe, kp):
    B, L, D = emb.shape
    c2 = lambda i: (0, 0)
    c3 = lambda i: (0, 0, 0)
    kernel = functools.partial(_transformer_kernel, n_blocks=N_BLOCKS,
                               n_heads=N_HEADS, d_k=D_K, d_v=D_V)
    return pl.pallas_call(
        kernel,
        out_shape=jax.ShapeDtypeStruct((B, L, OUT_PAD), jnp.float32),
        grid=(B,),
        in_specs=[
            pl.BlockSpec((None, L, D), lambda i: (i, 0, 0)),
            pl.BlockSpec((None, L, L), lambda i: (i, 0, 0)),
            pl.BlockSpec((L, D), c2),
            pl.BlockSpec((4, D), c2),
            pl.BlockSpec((N_BLOCKS, D, 3 * N_HEADS * D_K), c3),
            pl.BlockSpec((N_BLOCKS, 1, 3 * N_HEADS * D_K), c3),
            pl.BlockSpec((N_BLOCKS, N_HEADS * D_V, D), c3),
            pl.BlockSpec((N_BLOCKS, 1, D), c3),
            pl.BlockSpec((N_BLOCKS, 2, D), c3),
            pl.BlockSpec((N_BLOCKS, D, D_FF), c3),
            pl.BlockSpec((N_BLOCKS, 1, D_FF), c3),
            pl.BlockSpec((N_BLOCKS, D_FF, D), c3),
            pl.BlockSpec((N_BLOCKS, 1, D), c3),
            pl.BlockSpec((N_BLOCKS, 2, D), c3),
            pl.BlockSpec((D, OUT_PAD), c2),
            pl.BlockSpec((1, OUT_PAD), c2),
        ],
        out_specs=pl.BlockSpec((None, L, OUT_PAD), lambda i: (i, 0, 0)),
        scratch_shapes=[pltpu.VMEM((L, N_HEADS * D_V), jnp.float32)],
        compiler_params=pltpu.CompilerParams(
            dimension_semantics=("parallel",),
            vmem_limit_bytes=32 * 1024 * 1024),
    )(emb, mask, pe, kp["pre_ln"], kp["wqkv"], kp["bqkv"], kp["wo"], kp["bo"],
      kp["ln_attn"], kp["wf1"], kp["bf1"], kp["wf2"], kp["bf2"], kp["ln_ffn"],
      kp["w_out"], kp["b_out"])


# ----------------------------------------------------------------------------
# Parameters / packing / glue
# ----------------------------------------------------------------------------
def sinusoid_pos_encoding(max_len, dim):
    pos = jnp.arange(max_len, dtype=jnp.float32)[:, None]
    i = jnp.arange(dim // 2, dtype=jnp.float32)[None, :]
    angle = pos / jnp.power(10000.0, (2.0 * i) / dim)
    pe = jnp.zeros((max_len, dim), jnp.float32)
    pe = pe.at[:, 0::2].set(jnp.sin(angle))
    pe = pe.at[:, 1::2].set(jnp.cos(angle))
    return pe


def init_params(key, feat_dim=FEAT_DIM):
    keys = iter(jax.random.split(key, 80))

    def dense(in_d, out_d, scale=0.05):
        w = jax.random.normal(next(keys), (in_d, out_d), jnp.float32) * scale
        b = jnp.zeros((1, out_d), jnp.float32)
        return w, b

    p = {}
    p["l1_w"], p["l1_b"] = dense(F_RAW, F_RAW)
    p["l2_w"], p["l2_b"] = dense(F_RAW, F_RAW)
    p["l3_w"], p["l3_b"] = dense(F_RAW, 1)
    p["l4_w"], p["l4_b"] = dense(F_RAW, HID1)
    p["fc1_w"], p["fc1_b"] = dense(HID1, HID2)
    p["fc2_w"], p["fc2_b"] = dense(HID2, feat_dim)
    p["fc3_w"], p["fc3_b"] = dense(feat_dim, feat_dim)
    p["fc4_w"], p["fc4_b"] = dense(feat_dim, N_LANG)
    p["ln1_g"] = jnp.ones((feat_dim,), jnp.float32)
    p["ln1_b"] = jnp.zeros((feat_dim,), jnp.float32)
    p["ln2_g"] = jnp.ones((feat_dim,), jnp.float32)
    p["ln2_b"] = jnp.zeros((feat_dim,), jnp.float32)
    blocks = []
    for _ in range(N_BLOCKS):
        blk = {}
        blk["wq"], blk["bq"] = dense(feat_dim, N_HEADS * D_K)
        blk["wk"], blk["bk"] = dense(feat_dim, N_HEADS * D_K)
        blk["wv"], blk["bv"] = dense(feat_dim, N_HEADS * D_V)
        blk["wo"], blk["bo"] = dense(N_HEADS * D_V, feat_dim)
        blk["ln1_g"] = jnp.ones((feat_dim,), jnp.float32)
        blk["ln1_b"] = jnp.zeros((feat_dim,), jnp.float32)
        blk["wf1"], blk["bf1"] = dense(feat_dim, D_FF)
        blk["wf2"], blk["bf2"] = dense(D_FF, feat_dim)
        blk["ln2_g"] = jnp.ones((feat_dim,), jnp.float32)
        blk["ln2_b"] = jnp.zeros((feat_dim,), jnp.float32)
        blocks.append(blk)
    p["blocks"] = blocks
    p["out_w"], p["out_b"] = dense(feat_dim, N_LANG)
    p["pe"] = sinusoid_pos_encoding(140, feat_dim)
    return p


def _pad2(a, rows, cols):
    return jnp.pad(a, ((0, rows - a.shape[0]), (0, cols - a.shape[1])))


def pack_params(p):
    """One-time pad / cast / stack into the kernel-friendly layout."""
    bf = jnp.bfloat16
    kp = {}
    # Frame MLP + pooling (99 -> 128 lane padding; l3 column lane-replicated).
    kp["pw1"] = _pad2(p["l1_w"], F_PAD, F_PAD).astype(bf)
    kp["pb1"] = _pad2(p["l1_b"], 1, F_PAD)
    kp["pw2"] = _pad2(p["l2_w"], F_PAD, F_PAD).astype(bf)
    kp["pb2"] = _pad2(p["l2_b"], 1, F_PAD)
    kp["pw3"] = jnp.tile(_pad2(p["l3_w"], F_PAD, 1), (1, F_PAD)).astype(bf)
    kp["pb3"] = jnp.tile(p["l3_b"], (1, F_PAD))
    # Fused segment MLP.
    kp["l4_w"] = _pad2(p["l4_w"], F_PAD, HID1).astype(bf)
    kp["l4_b"] = p["l4_b"]
    kp["fc1_w"] = _pad2(p["fc1_w"], HID1, HID2_PAD).astype(bf)
    kp["fc1_b"] = _pad2(p["fc1_b"], 1, HID2_PAD)
    kp["fc2_w"] = _pad2(p["fc2_w"], HID2_PAD, FEAT_DIM).astype(bf)
    kp["fc2_b"] = p["fc2_b"]
    kp["fc3_w"] = p["fc3_w"].astype(bf)
    kp["fc3_b"] = p["fc3_b"]
    kp["fc4_w"] = _pad2(p["fc4_w"], FEAT_DIM, OUT_PAD).astype(bf)
    kp["fc4_b"] = _pad2(p["fc4_b"], 1, OUT_PAD)
    # Pre-encoder layer norms.
    kp["pre_ln"] = jnp.stack([p["ln1_g"], p["ln1_b"], p["ln2_g"], p["ln2_b"]])
    # Encoder blocks, stacked along a leading axis of N_BLOCKS.
    blks = p["blocks"]
    kp["wqkv"] = jnp.stack([jnp.concatenate([b["wq"], b["wk"], b["wv"]], axis=1)
                            for b in blks]).astype(bf)
    kp["bqkv"] = jnp.stack([jnp.concatenate([b["bq"], b["bk"], b["bv"]], axis=1)
                            for b in blks])
    kp["wo"] = jnp.stack([b["wo"] for b in blks]).astype(bf)
    kp["bo"] = jnp.stack([b["bo"] for b in blks])
    kp["ln_attn"] = jnp.stack([jnp.stack([b["ln1_g"], b["ln1_b"]]) for b in blks])
    kp["wf1"] = jnp.stack([b["wf1"] for b in blks]).astype(bf)
    kp["bf1"] = jnp.stack([b["bf1"] for b in blks])
    kp["wf2"] = jnp.stack([b["wf2"] for b in blks]).astype(bf)
    kp["bf2"] = jnp.stack([b["bf2"] for b in blks])
    kp["ln_ffn"] = jnp.stack([jnp.stack([b["ln2_g"], b["ln2_b"]]) for b in blks])
    # Output head (n_lang padded to 128 lanes).
    kp["w_out"] = _pad2(p["out_w"], FEAT_DIM, OUT_PAD).astype(bf)
    kp["b_out"] = _pad2(p["out_b"], 1, OUT_PAD)
    kp["pe"] = p["pe"]
    return kp


def forward(kp, x, seq_len, atten_mask):
    b, s, f = x.shape
    assert f == F_RAW and s % 10 == 0
    G = (b * s) // 10
    L = s // 10

    # Row tile shared by the pooling and MLP kernels (multiple of 8).
    r = 256 if G >= 256 else _round_up(G, 8)
    gp = _round_up(G, r)

    # Frame-major layout (10, Gp, 128): groups are lane/sublane-dense rows and
    # the group softmax becomes an elementwise reduce over the leading axis.
    xg = x.reshape(G, 10, F_RAW).transpose(1, 0, 2)
    xg = jnp.pad(xg, ((0, 0), (0, gp - G), (0, F_PAD - F_RAW)))
    pooled = attention_pool(xg, kp, r)                        # (Gp, 128)

    emb_p, cnn_p = mlp_chain(pooled, kp, r)                   # (Gp, 256), (Gp, 128)
    cnn_output = cnn_p[:G, :N_LANG]
    embedding = emb_p[:G].reshape(b, L, FEAT_DIM)

    pe = kp["pe"][:L]
    mask = atten_mask
    if mask.ndim == 2:
        mask = jnp.broadcast_to(mask[None], (b, L, L))
    out_p = transformer(embedding, mask.astype(jnp.float32), pe, kp)  # (b, L, 128)
    output = out_p[:, :, :N_LANG]
    return output, cnn_output


if __name__ == "__main__":
    key = jax.random.PRNGKey(0)
    pkey, xkey = jax.random.split(key)
    params = init_params(pkey)
    kp = pack_params(params)

    b, s = 2, 20                      # 99 features per frame, 10 frames per segment
    x = jax.random.normal(xkey, (b, s, 99), jnp.float32)
    L = s // 10
    seq_len = jnp.full((b,), L, jnp.int32)
    atten_mask = jnp.zeros((b, L, L), jnp.float32)   # additive mask, 0 = attend

    output, cnn_output = forward(kp, x, seq_len, atten_mask)
    jax.block_until_ready((output, cnn_output))
    assert output.shape == (b, L, N_LANG)
    assert cnn_output.shape == ((b * s) // 10, N_LANG)
    print("KERNEL_OK")
</pallas_src>

<mosaic_0001>
module attributes {stable_mosaic.version = 11 : i64} {
  func.func @_pool_kernel(%arg0: i32, %arg1: memref<10x8x128xf32, #tpu.memory_space<vmem>>, %arg2: memref<128x128xbf16, #tpu.memory_space<vmem>>, %arg3: memref<1x128xf32, #tpu.memory_space<vmem>>, %arg4: memref<128x128xbf16, #tpu.memory_space<vmem>>, %arg5: memref<1x128xf32, #tpu.memory_space<vmem>>, %arg6: memref<128x128xbf16, #tpu.memory_space<vmem>>, %arg7: memref<1x128xf32, #tpu.memory_space<vmem>>, %arg8: memref<8x128xf32, #tpu.memory_space<vmem>>) attributes {dimension_semantics = [#tpu.dimension_semantics<parallel>], iteration_bounds = array<i64: 1>, scalar_prefetch = 0 : i64, scratch_operands = 0 : i64, tpu.core_type = #tpu.core_type<tc>, window_params = [{transform_indices = @transform_0, window_bounds = array<i64: 10, 8, 128>}, {pipeline_mode = #tpu.pipeline_mode<synchronous>, transform_indices = @transform_1, window_bounds = array<i64: 128, 128>}, {pipeline_mode = #tpu.pipeline_mode<synchronous>, transform_indices = @transform_2, window_bounds = array<i64: 1, 128>}, {pipeline_mode = #tpu.pipeline_mode<synchronous>, transform_indices = @transform_3, window_bounds = array<i64: 128, 128>}, {pipeline_mode = #tpu.pipeline_mode<synchronous>, transform_indices = @transform_4, window_bounds = array<i64: 1, 128>}, {pipeline_mode = #tpu.pipeline_mode<synchronous>, transform_indices = @transform_5, window_bounds = array<i64: 128, 128>}, {pipeline_mode = #tpu.pipeline_mode<synchronous>, transform_indices = @transform_6, window_bounds = array<i64: 1, 128>}, {transform_indices = @transform_7, window_bounds = array<i64: 8, 128>}]} {
    %c0 = arith.constant 0 : index
    %c0_0 = arith.constant 0 : index
    %0 = vector.load %arg2[%c0, %c0_0] : memref<128x128xbf16, #tpu.memory_space<vmem>>, vector<128x128xbf16>
    %c0_1 = arith.constant 0 : index
    %c0_2 = arith.constant 0 : index
    %1 = vector.load %arg4[%c0_1, %c0_2] : memref<128x128xbf16, #tpu.memory_space<vmem>>, vector<128x128xbf16>
    %c0_3 = arith.constant 0 : index
    %c0_4 = arith.constant 0 : index
    %2 = vector.load %arg6[%c0_3, %c0_4] : memref<128x128xbf16, #tpu.memory_space<vmem>>, vector<128x128xbf16>
    %c0_5 = arith.constant 0 : index
    %c0_6 = arith.constant 0 : index
    %3 = vector.load %arg3[%c0_5, %c0_6] : memref<1x128xf32, #tpu.memory_space<vmem>>, vector<1x128xf32>
    %c0_7 = arith.constant 0 : index
    %c0_8 = arith.constant 0 : index
    %4 = vector.load %arg5[%c0_7, %c0_8] : memref<1x128xf32, #tpu.memory_space<vmem>>, vector<1x128xf32>
    %c0_9 = arith.constant 0 : index
    %c0_10 = arith.constant 0 : index
    %5 = vector.load %arg7[%c0_9, %c0_10] : memref<1x128xf32, #tpu.memory_space<vmem>>, vector<1x128xf32>
    %c0_11 = arith.constant 0 : index
    %c0_12 = arith.constant 0 : index
    %c0_13 = arith.constant 0 : index
    %6 = vector.load %arg1[%c0_11, %c0_12, %c0_13] : memref<10x8x128xf32, #tpu.memory_space<vmem>>, vector<1x8x128xf32>
    %7 = vector.shape_cast %6 : vector<1x8x128xf32> to vector<8x128xf32>
    %8 = arith.truncf %7 : vector<8x128xf32> to vector<8x128xbf16>
    %cst = arith.constant dense<0.000000e+00> : vector<8x128xf32>
    %9 = tpu.matmul %8, %0, %cst {dimension_numbers = #tpu.dot_dimension_numbers<[1], [0], [0], [1], [0, 0, 1, 1], [], []>} : vector<8x128xbf16>, vector<128x128xbf16>, vector<8x128xf32> -> vector<8x128xf32>
    %10 = vector.broadcast %3 : vector<1x128xf32> to vector<8x128xf32>
    %11 = arith.addf %9, %10 : vector<8x128xf32>
    %cst_14 = arith.constant 0.000000e+00 : f32
    %12 = vector.broadcast %cst_14 : f32 to vector<8x128xf32>
    %13 = arith.maximumf %11, %12 : vector<8x128xf32>
    %14 = arith.truncf %13 : vector<8x128xf32> to vector<8x128xbf16>
    %cst_15 = arith.constant dense<0.000000e+00> : vector<8x128xf32>
    %15 = tpu.matmul %14, %1, %cst_15 {dimension_numbers = #tpu.dot_dimension_numbers<[1], [0], [0], [1], [0, 0, 1, 1], [], []>} : vector<8x128xbf16>, vector<128x128xbf16>, vector<8x128xf32> -> vector<8x128xf32>
    %16 = vector.broadcast %4 : vector<1x128xf32> to vector<8x128xf32>
    %17 = arith.addf %15, %16 : vector<8x128xf32>
    %cst_16 = arith.constant 0.000000e+00 : f32
    %18 = vector.broadcast %cst_16 : f32 to vector<8x128xf32>
    %19 = arith.maximumf %17, %18 : vector<8x128xf32>
    %20 = arith.truncf %19 : vector<8x128xf32> to vector<8x128xbf16>
    %cst_17 = arith.constant dense<0.000000e+00> : vector<8x128xf32>
    %21 = tpu.matmul %20, %2, %cst_17 {dimension_numbers = #tpu.dot_dimension_numbers<[1], [0], [0], [1], [0, 0, 1, 1], [], []>} : vector<8x128xbf16>, vector<128x128xbf16>, vector<8x128xf32> -> vector<8x128xf32>
    %22 = vector.broadcast %5 : vector<1x128xf32> to vector<8x128xf32>
    %23 = arith.addf %21, %22 : vector<8x128xf32>
    %cst_18 = arith.constant 0.000000e+00 : f32
    %24 = vector.broadcast %cst_18 : f32 to vector<8x128xf32>
    %25 = arith.maximumf %23, %24 : vector<8x128xf32>
    %c1 = arith.constant 1 : index
    %c0_19 = arith.constant 0 : index
    %c0_20 = arith.constant 0 : index
    %26 = vector.load %arg1[%c1, %c0_19, %c0_20] : memref<10x8x128xf32, #tpu.memory_space<vmem>>, vector<1x8x128xf32>
    %27 = vector.shape_cast %26 : vector<1x8x128xf32> to vector<8x128xf32>
    %28 = arith.truncf %27 : vector<8x128xf32> to vector<8x128xbf16>
    %cst_21 = arith.constant dense<0.000000e+00> : vector<8x128xf32>
    %29 = tpu.matmul %28, %0, %cst_21 {dimension_numbers = #tpu.dot_dimension_numbers<[1], [0], [0], [1], [0, 0, 1, 1], [], []>} : vector<8x128xbf16>, vector<128x128xbf16>, vector<8x128xf32> -> vector<8x128xf32>
    %30 = vector.broadcast %3 : vector<1x128xf32> to vector<8x128xf32>
    %31 = arith.addf %29, %30 : vector<8x128xf32>
    %cst_22 = arith.constant 0.000000e+00 : f32
    %32 = vector.broadcast %cst_22 : f32 to vector<8x128xf32>
    %33 = arith.maximumf %31, %32 : vector<8x128xf32>
    %34 = arith.truncf %33 : vector<8x128xf32> to vector<8x128xbf16>
    %cst_23 = arith.constant dense<0.000000e+00> : vector<8x128xf32>
    %35 = tpu.matmul %34, %1, %cst_23 {dimension_numbers = #tpu.dot_dimension_numbers<[1], [0], [0], [1], [0, 0, 1, 1], [], []>} : vector<8x128xbf16>, vector<128x128xbf16>, vector<8x128xf32> -> vector<8x128xf32>
    %36 = vector.broadcast %4 : vector<1x128xf32> to vector<8x128xf32>
    %37 = arith.addf %35, %36 : vector<8x128xf32>
    %cst_24 = arith.constant 0.000000e+00 : f32
    %38 = vector.broadcast %cst_24 : f32 to vector<8x128xf32>
    %39 = arith.maximumf %37, %38 : vector<8x128xf32>
    %40 = arith.truncf %39 : vector<8x128xf32> to vector<8x128xbf16>
    %cst_25 = arith.constant dense<0.000000e+00> : vector<8x128xf32>
    %41 = tpu.matmul %40, %2, %cst_25 {dimension_numbers = #tpu.dot_dimension_numbers<[1], [0], [0], [1], [0, 0, 1, 1], [], []>} : vector<8x128xbf16>, vector<128x128xbf16>, vector<8x128xf32> -> vector<8x128xf32>
    %42 = vector.broadcast %5 : vector<1x128xf32> to vector<8x128xf32>
    %43 = arith.addf %41, %42 : vector<8x128xf32>
    %cst_26 = arith.constant 0.000000e+00 : f32
    %44 = vector.broadcast %cst_26 : f32 to vector<8x128xf32>
    %45 = arith.maximumf %43, %44 : vector<8x128xf32>
    %c2 = arith.constant 2 : index
    %c0_27 = arith.constant 0 : index
    %c0_28 = arith.constant 0 : index
    %46 = vector.load %arg1[%c2, %c0_27, %c0_28] : memref<10x8x128xf32, #tpu.memory_space<vmem>>, vector<1x8x128xf32>
    %47 = vector.shape_cast %46 : vector<1x8x128xf32> to vector<8x128xf32>
    %48 = arith.truncf %47 : vector<8x128xf32> to vector<8x128xbf16>
    %cst_29 = arith.constant dense<0.000000e+00> : vector<8x128xf32>
    %49 = tpu.matmul %48, %0, %cst_29 {dimension_numbers = #tpu.dot_dimension_numbers<[1], [0], [0], [1], [0, 0, 1, 1], [], []>} : vector<8x128xbf16>, vector<128x128xbf16>, vector<8x128xf32> -> vector<8x128xf32>
    %50 = vector.broadcast %3 : vector<1x128xf32> to vector<8x128xf32>
    %51 = arith.addf %49, %50 : vector<8x128xf32>
    %cst_30 = arith.constant 0.000000e+00 : f32
    %52 = vector.broadcast %cst_30 : f32 to vector<8x128xf32>
    %53 = arith.maximumf %51, %52 : vector<8x128xf32>
    %54 = arith.truncf %53 : vector<8x128xf32> to vector<8x128xbf16>
    %cst_31 = arith.constant dense<0.000000e+00> : vector<8x128xf32>
    %55 = tpu.matmul %54, %1, %cst_31 {dimension_numbers = #tpu.dot_dimension_numbers<[1], [0], [0], [1], [0, 0, 1, 1], [], []>} : vector<8x128xbf16>, vector<128x128xbf16>, vector<8x128xf32> -> vector<8x128xf32>
    %56 = vector.broadcast %4 : vector<1x128xf32> to vector<8x128xf32>
    %57 = arith.addf %55, %56 : vector<8x128xf32>
    %cst_32 = arith.constant 0.000000e+00 : f32
    %58 = vector.broadcast %cst_32 : f32 to vector<8x128xf32>
    %59 = arith.maximumf %57, %58 : vector<8x128xf32>
    %60 = arith.truncf %59 : vector<8x128xf32> to vector<8x128xbf16>
    %cst_33 = arith.constant dense<0.000000e+00> : vector<8x128xf32>
    %61 = tpu.matmul %60, %2, %cst_33 {dimension_numbers = #tpu.dot_dimension_numbers<[1], [0], [0], [1], [0, 0, 1, 1], [], []>} : vector<8x128xbf16>, vector<128x128xbf16>, vector<8x128xf32> -> vector<8x128xf32>
    %62 = vector.broadcast %5 : vector<1x128xf32> to vector<8x128xf32>
    %63 = arith.addf %61, %62 : vector<8x128xf32>
    %cst_34 = arith.constant 0.000000e+00 : f32
    %64 = vector.broadcast %cst_34 : f32 to vector<8x128xf32>
    %65 = arith.maximumf %63, %64 : vector<8x128xf32>
    %c3 = arith.constant 3 : index
    %c0_35 = arith.constant 0 : index
    %c0_36 = arith.constant 0 : index
    %66 = vector.load %arg1[%c3, %c0_35, %c0_36] : memref<10x8x128xf32, #tpu.memory_space<vmem>>, vector<1x8x128xf32>
    %67 = vector.shape_cast %66 : vector<1x8x128xf32> to vector<8x128xf32>
    %68 = arith.truncf %67 : vector<8x128xf32> to vector<8x128xbf16>
    %cst_37 = arith.constant dense<0.000000e+00> : vector<8x128xf32>
    %69 = tpu.matmul %68, %0, %cst_37 {dimension_numbers = #tpu.dot_dimension_numbers<[1], [0], [0], [1], [0, 0, 1, 1], [], []>} : vector<8x128xbf16>, vector<128x128xbf16>, vector<8x128xf32> -> vector<8x128xf32>
    %70 = vector.broadcast %3 : vector<1x128xf32> to vector<8x128xf32>
    %71 = arith.addf %69, %70 : vector<8x128xf32>
    %cst_38 = arith.constant 0.000000e+00 : f32
    %72 = vector.broadcast %cst_38 : f32 to vector<8x128xf32>
    %73 = arith.maximumf %71, %72 : vector<8x128xf32>
    %74 = arith.truncf %73 : vector<8x128xf32> to vector<8x128xbf16>
    %cst_39 = arith.constant dense<0.000000e+00> : vector<8x128xf32>
    %75 = tpu.matmul %74, %1, %cst_39 {dimension_numbers = #tpu.dot_dimension_numbers<[1], [0], [0], [1], [0, 0, 1, 1], [], []>} : vector<8x128xbf16>, vector<128x128xbf16>, vector<8x128xf32> -> vector<8x128xf32>
    %76 = vector.broadcast %4 : vector<1x128xf32> to vector<8x128xf32>
    %77 = arith.addf %75, %76 : vector<8x128xf32>
    %cst_40 = arith.constant 0.000000e+00 : f32
    %78 = vector.broadcast %cst_40 : f32 to vector<8x128xf32>
    %79 = arith.maximumf %77, %78 : vector<8x128xf32>
    %80 = arith.truncf %79 : vector<8x128xf32> to vector<8x128xbf16>
    %cst_41 = arith.constant dense<0.000000e+00> : vector<8x128xf32>
    %81 = tpu.matmul %80, %2, %cst_41 {dimension_numbers = #tpu.dot_dimension_numbers<[1], [0], [0], [1], [0, 0, 1, 1], [], []>} : vector<8x128xbf16>, vector<128x128xbf16>, vector<8x128xf32> -> vector<8x128xf32>
    %82 = vector.broadcast %5 : vector<1x128xf32> to vector<8x128xf32>
    %83 = arith.addf %81, %82 : vector<8x128xf32>
    %cst_42 = arith.constant 0.000000e+00 : f32
    %84 = vector.broadcast %cst_42 : f32 to vector<8x128xf32>
    %85 = arith.maximumf %83, %84 : vector<8x128xf32>
    %c4 = arith.constant 4 : index
    %c0_43 = arith.constant 0 : index
    %c0_44 = arith.constant 0 : index
    %86 = vector.load %arg1[%c4, %c0_43, %c0_44] : memref<10x8x128xf32, #tpu.memory_space<vmem>>, vector<1x8x128xf32>
    %87 = vector.shape_cast %86 : vector<1x8x128xf32> to vector<8x128xf32>
    %88 = arith.truncf %87 : vector<8x128xf32> to vector<8x128xbf16>
    %cst_45 = arith.constant dense<0.000000e+00> : vector<8x128xf32>
    %89 = tpu.matmul %88, %0, %cst_45 {dimension_numbers = #tpu.dot_dimension_numbers<[1], [0], [0], [1], [0, 0, 1, 1], [], []>} : vector<8x128xbf16>, vector<128x128xbf16>, vector<8x128xf32> -> vector<8x128xf32>
    %90 = vector.broadcast %3 : vector<1x128xf32> to vector<8x128xf32>
    %91 = arith.addf %89, %90 : vector<8x128xf32>
    %cst_46 = arith.constant 0.000000e+00 : f32
    %92 = vector.broadcast %cst_46 : f32 to vector<8x128xf32>
    %93 = arith.maximumf %91, %92 : vector<8x128xf32>
    %94 = arith.truncf %93 : vector<8x128xf32> to vector<8x128xbf16>
    %cst_47 = arith.constant dense<0.000000e+00> : vector<8x128xf32>
    %95 = tpu.matmul %94, %1, %cst_47 {dimension_numbers = #tpu.dot_dimension_numbers<[1], [0], [0], [1], [0, 0, 1, 1], [], []>} : vector<8x128xbf16>, vector<128x128xbf16>, vector<8x128xf32> -> vector<8x128xf32>
    %96 = vector.broadcast %4 : vector<1x128xf32> to vector<8x128xf32>
    %97 = arith.addf %95, %96 : vector<8x128xf32>
    %cst_48 = arith.constant 0.000000e+00 : f32
    %98 = vector.broadcast %cst_48 : f32 to vector<8x128xf32>
    %99 = arith.maximumf %97, %98 : vector<8x128xf32>
    %100 = arith.truncf %99 : vector<8x128xf32> to vector<8x128xbf16>
    %cst_49 = arith.constant dense<0.000000e+00> : vector<8x128xf32>
    %101 = tpu.matmul %100, %2, %cst_49 {dimension_numbers = #tpu.dot_dimension_numbers<[1], [0], [0], [1], [0, 0, 1, 1], [], []>} : vector<8x128xbf16>, vector<128x128xbf16>, vector<8x128xf32> -> vector<8x128xf32>
    %102 = vector.broadcast %5 : vector<1x128xf32> to vector<8x128xf32>
    %103 = arith.addf %101, %102 : vector<8x128xf32>
    %cst_50 = arith.constant 0.000000e+00 : f32
    %104 = vector.broadcast %cst_50 : f32 to vector<8x128xf32>
    %105 = arith.maximumf %103, %104 : vector<8x128xf32>
    %c5 = arith.constant 5 : index
    %c0_51 = arith.constant 0 : index
    %c0_52 = arith.constant 0 : index
    %106 = vector.load %arg1[%c5, %c0_51, %c0_52] : memref<10x8x128xf32, #tpu.memory_space<vmem>>, vector<1x8x128xf32>
    %107 = vector.shape_cast %106 : vector<1x8x128xf32> to vector<8x128xf32>
    %108 = arith.truncf %107 : vector<8x128xf32> to vector<8x128xbf16>
    %cst_53 = arith.constant dense<0.000000e+00> : vector<8x128xf32>
    %109 = tpu.matmul %108, %0, %cst_53 {dimension_numbers = #tpu.dot_dimension_numbers<[1], [0], [0], [1], [0, 0, 1, 1], [], []>} : vector<8x128xbf16>, vector<128x128xbf16>, vector<8x128xf32> -> vector<8x128xf32>
    %110 = vector.broadcast %3 : vector<1x128xf32> to vector<8x128xf32>
    %111 = arith.addf %109, %110 : vector<8x128xf32>
    %cst_54 = arith.constant 0.000000e+00 : f32
    %112 = vector.broadcast %cst_54 : f32 to vector<8x128xf32>
    %113 = arith.maximumf %111, %112 : vector<8x128xf32>
    %114 = arith.truncf %113 : vector<8x128xf32> to vector<8x128xbf16>
    %cst_55 = arith.constant dense<0.000000e+00> : vector<8x128xf32>
    %115 = tpu.matmul %114, %1, %cst_55 {dimension_numbers = #tpu.dot_dimension_numbers<[1], [0], [0], [1], [0, 0, 1, 1], [], []>} : vector<8x128xbf16>, vector<128x128xbf16>, vector<8x128xf32> -> vector<8x128xf32>
    %116 = vector.broadcast %4 : vector<1x128xf32> to vector<8x128xf32>
    %117 = arith.addf %115, %116 : vector<8x128xf32>
    %cst_56 = arith.constant 0.000000e+00 : f32
    %118 = vector.broadcast %cst_56 : f32 to vector<8x128xf32>
    %119 = arith.maximumf %117, %118 : vector<8x128xf32>
    %120 = arith.truncf %119 : vector<8x128xf32> to vector<8x128xbf16>
    %cst_57 = arith.constant dense<0.000000e+00> : vector<8x128xf32>
    %121 = tpu.matmul %120, %2, %cst_57 {dimension_numbers = #tpu.dot_dimension_numbers<[1], [0], [0], [1], [0, 0, 1, 1], [], []>} : vector<8x128xbf16>, vector<128x128xbf16>, vector<8x128xf32> -> vector<8x128xf32>
    %122 = vector.broadcast %5 : vector<1x128xf32> to vector<8x128xf32>
    %123 = arith.addf %121, %122 : vector<8x128xf32>
    %cst_58 = arith.constant 0.000000e+00 : f32
    %124 = vector.broadcast %cst_58 : f32 to vector<8x128xf32>
    %125 = arith.maximumf %123, %124 : vector<8x128xf32>
    %c6 = arith.constant 6 : index
    %c0_59 = arith.constant 0 : index
    %c0_60 = arith.constant 0 : index
    %126 = vector.load %arg1[%c6, %c0_59, %c0_60] : memref<10x8x128xf32, #tpu.memory_space<vmem>>, vector<1x8x128xf32>
    %127 = vector.shape_cast %126 : vector<1x8x128xf32> to vector<8x128xf32>
    %128 = arith.truncf %127 : vector<8x128xf32> to vector<8x128xbf16>
    %cst_61 = arith.constant dense<0.000000e+00> : vector<8x128xf32>
    %129 = tpu.matmul %128, %0, %cst_61 {dimension_numbers = #tpu.dot_dimension_numbers<[1], [0], [0], [1], [0, 0, 1, 1], [], []>} : vector<8x128xbf16>, vector<128x128xbf16>, vector<8x128xf32> -> vector<8x128xf32>
    %130 = vector.broadcast %3 : vector<1x128xf32> to vector<8x128xf32>
    %131 = arith.addf %129, %130 : vector<8x128xf32>
    %cst_62 = arith.constant 0.000000e+00 : f32
    %132 = vector.broadcast %cst_62 : f32 to vector<8x128xf32>
    %133 = arith.maximumf %131, %132 : vector<8x128xf32>
    %134 = arith.truncf %133 : vector<8x128xf32> to vector<8x128xbf16>
    %cst_63 = arith.constant dense<0.000000e+00> : vector<8x128xf32>
    %135 = tpu.matmul %134, %1, %cst_63 {dimension_numbers = #tpu.dot_dimension_numbers<[1], [0], [0], [1], [0, 0, 1, 1], [], []>} : vector<8x128xbf16>, vector<128x128xbf16>, vector<8x128xf32> -> vector<8x128xf32>
    %136 = vector.broadcast %4 : vector<1x128xf32> to vector<8x128xf32>
    %137 = arith.addf %135, %136 : vector<8x128xf32>
    %cst_64 = arith.constant 0.000000e+00 : f32
    %138 = vector.broadcast %cst_64 : f32 to vector<8x128xf32>
    %139 = arith.maximumf %137, %138 : vector<8x128xf32>
    %140 = arith.truncf %139 : vector<8x128xf32> to vector<8x128xbf16>
    %cst_65 = arith.constant dense<0.000000e+00> : vector<8x128xf32>
    %141 = tpu.matmul %140, %2, %cst_65 {dimension_numbers = #tpu.dot_dimension_numbers<[1], [0], [0], [1], [0, 0, 1, 1], [], []>} : vector<8x128xbf16>, vector<128x128xbf16>, vector<8x128xf32> -> vector<8x128xf32>
    %142 = vector.broadcast %5 : vector<1x128xf32> to vector<8x128xf32>
    %143 = arith.addf %141, %142 : vector<8x128xf32>
    %cst_66 = arith.constant 0.000000e+00 : f32
    %144 = vector.broadcast %cst_66 : f32 to vector<8x128xf32>
    %145 = arith.maximumf %143, %144 : vector<8x128xf32>
    %c7 = arith.constant 7 : index
    %c0_67 = arith.constant 0 : index
    %c0_68 = arith.constant 0 : index
    %146 = vector.load %arg1[%c7, %c0_67, %c0_68] : memref<10x8x128xf32, #tpu.memory_space<vmem>>, vector<1x8x128xf32>
    %147 = vector.shape_cast %146 : vector<1x8x128xf32> to vector<8x128xf32>
    %148 = arith.truncf %147 : vector<8x128xf32> to vector<8x128xbf16>
    %cst_69 = arith.constant dense<0.000000e+00> : vector<8x128xf32>
    %149 = tpu.matmul %148, %0, %cst_69 {dimension_numbers = #tpu.dot_dimension_numbers<[1], [0], [0], [1], [0, 0, 1, 1], [], []>} : vector<8x128xbf16>, vector<128x128xbf16>, vector<8x128xf32> -> vector<8x128xf32>
    %150 = vector.broadcast %3 : vector<1x128xf32> to vector<8x128xf32>
    %151 = arith.addf %149, %150 : vector<8x128xf32>
    %cst_70 = arith.constant 0.000000e+00 : f32
    %152 = vector.broadcast %cst_70 : f32 to vector<8x128xf32>
    %153 = arith.maximumf %151, %152 : vector<8x128xf32>
    %154 = arith.truncf %153 : vector<8x128xf32> to vector<8x128xbf16>
    %cst_71 = arith.constant dense<0.000000e+00> : vector<8x128xf32>
    %155 = tpu.matmul %154, %1, %cst_71 {dimension_numbers = #tpu.dot_dimension_numbers<[1], [0], [0], [1], [0, 0, 1, 1], [], []>} : vector<8x128xbf16>, vector<128x128xbf16>, vector<8x128xf32> -> vector<8x128xf32>
    %156 = vector.broadcast %4 : vector<1x128xf32> to vector<8x128xf32>
    %157 = arith.addf %155, %156 : vector<8x128xf32>
    %cst_72 = arith.constant 0.000000e+00 : f32
    %158 = vector.broadcast %cst_72 : f32 to vector<8x128xf32>
    %159 = arith.maximumf %157, %158 : vector<8x128xf32>
    %160 = arith.truncf %159 : vector<8x128xf32> to vector<8x128xbf16>
    %cst_73 = arith.constant dense<0.000000e+00> : vector<8x128xf32>
    %161 = tpu.matmul %160, %2, %cst_73 {dimension_numbers = #tpu.dot_dimension_numbers<[1], [0], [0], [1], [0, 0, 1, 1], [], []>} : vector<8x128xbf16>, vector<128x128xbf16>, vector<8x128xf32> -> vector<8x128xf32>
    %162 = vector.broadcast %5 : vector<1x128xf32> to vector<8x128xf32>
    %163 = arith.addf %161, %162 : vector<8x128xf32>
    %cst_74 = arith.constant 0.000000e+00 : f32
    %164 = vector.broadcast %cst_74 : f32 to vector<8x128xf32>
    %165 = arith.maximumf %163, %164 : vector<8x128xf32>
    %c8 = arith.constant 8 : index
    %c0_75 = arith.constant 0 : index
    %c0_76 = arith.constant 0 : index
    %166 = vector.load %arg1[%c8, %c0_75, %c0_76] : memref<10x8x128xf32, #tpu.memory_space<vmem>>, vector<1x8x128xf32>
    %167 = vector.shape_cast %166 : vector<1x8x128xf32> to vector<8x128xf32>
    %168 = arith.truncf %167 : vector<8x128xf32> to vector<8x128xbf16>
    %cst_77 = arith.constant dense<0.000000e+00> : vector<8x128xf32>
    %169 = tpu.matmul %168, %0, %cst_77 {dimension_numbers = #tpu.dot_dimension_numbers<[1], [0], [0], [1], [0, 0, 1, 1], [], []>} : vector<8x128xbf16>, vector<128x128xbf16>, vector<8x128xf32> -> vector<8x128xf32>
    %170 = vector.broadcast %3 : vector<1x128xf32> to vector<8x128xf32>
    %171 = arith.addf %169, %170 : vector<8x128xf32>
    %cst_78 = arith.constant 0.000000e+00 : f32
    %172 = vector.broadcast %cst_78 : f32 to vector<8x128xf32>
    %173 = arith.maximumf %171, %172 : vector<8x128xf32>
    %174 = arith.truncf %173 : vector<8x128xf32> to vector<8x128xbf16>
    %cst_79 = arith.constant dense<0.000000e+00> : vector<8x128xf32>
    %175 = tpu.matmul %174, %1, %cst_79 {dimension_numbers = #tpu.dot_dimension_numbers<[1], [0], [0], [1], [0, 0, 1, 1], [], []>} : vector<8x128xbf16>, vector<128x128xbf16>, vector<8x128xf32> -> vector<8x128xf32>
    %176 = vector.broadcast %4 : vector<1x128xf32> to vector<8x128xf32>
    %177 = arith.addf %175, %176 : vector<8x128xf32>
    %cst_80 = arith.constant 0.000000e+00 : f32
    %178 = vector.broadcast %cst_80 : f32 to vector<8x128xf32>
    %179 = arith.maximumf %177, %178 : vector<8x128xf32>
    %180 = arith.truncf %179 : vector<8x128xf32> to vector<8x128xbf16>
    %cst_81 = arith.constant dense<0.000000e+00> : vector<8x128xf32>
    %181 = tpu.matmul %180, %2, %cst_81 {dimension_numbers = #tpu.dot_dimension_numbers<[1], [0], [0], [1], [0, 0, 1, 1], [], []>} : vector<8x128xbf16>, vector<128x128xbf16>, vector<8x128xf32> -> vector<8x128xf32>
    %182 = vector.broadcast %5 : vector<1x128xf32> to vector<8x128xf32>
    %183 = arith.addf %181, %182 : vector<8x128xf32>
    %cst_82 = arith.constant 0.000000e+00 : f32
    %184 = vector.broadcast %cst_82 : f32 to vector<8x128xf32>
    %185 = arith.maximumf %183, %184 : vector<8x128xf32>
    %c9 = arith.constant 9 : index
    %c0_83 = arith.constant 0 : index
    %c0_84 = arith.constant 0 : index
    %186 = vector.load %arg1[%c9, %c0_83, %c0_84] : memref<10x8x128xf32, #tpu.memory_space<vmem>>, vector<1x8x128xf32>
    %187 = vector.shape_cast %186 : vector<1x8x128xf32> to vector<8x128xf32>
    %188 = arith.truncf %187 : vector<8x128xf32> to vector<8x128xbf16>
    %cst_85 = arith.constant dense<0.000000e+00> : vector<8x128xf32>
    %189 = tpu.matmul %188, %0, %cst_85 {dimension_numbers = #tpu.dot_dimension_numbers<[1], [0], [0], [1], [0, 0, 1, 1], [], []>} : vector<8x128xbf16>, vector<128x128xbf16>, vector<8x128xf32> -> vector<8x128xf32>
    %190 = vector.broadcast %3 : vector<1x128xf32> to vector<8x128xf32>
    %191 = arith.addf %189, %190 : vector<8x128xf32>
    %cst_86 = arith.constant 0.000000e+00 : f32
    %192 = vector.broadcast %cst_86 : f32 to vector<8x128xf32>
    %193 = arith.maximumf %191, %192 : vector<8x128xf32>
    %194 = arith.truncf %193 : vector<8x128xf32> to vector<8x128xbf16>
    %cst_87 = arith.constant dense<0.000000e+00> : vector<8x128xf32>
    %195 = tpu.matmul %194, %1, %cst_87 {dimension_numbers = #tpu.dot_dimension_numbers<[1], [0], [0], [1], [0, 0, 1, 1], [], []>} : vector<8x128xbf16>, vector<128x128xbf16>, vector<8x128xf32> -> vector<8x128xf32>
    %196 = vector.broadcast %4 : vector<1x128xf32> to vector<8x128xf32>
    %197 = arith.addf %195, %196 : vector<8x128xf32>
    %cst_88 = arith.constant 0.000000e+00 : f32
    %198 = vector.broadcast %cst_88 : f32 to vector<8x128xf32>
    %199 = arith.maximumf %197, %198 : vector<8x128xf32>
    %200 = arith.truncf %199 : vector<8x128xf32> to vector<8x128xbf16>
    %cst_89 = arith.constant dense<0.000000e+00> : vector<8x128xf32>
    %201 = tpu.matmul %200, %2, %cst_89 {dimension_numbers = #tpu.dot_dimension_numbers<[1], [0], [0], [1], [0, 0, 1, 1], [], []>} : vector<8x128xbf16>, vector<128x128xbf16>, vector<8x128xf32> -> vector<8x128xf32>
    %202 = vector.broadcast %5 : vector<1x128xf32> to vector<8x128xf32>
    %203 = arith.addf %201, %202 : vector<8x128xf32>
    %cst_90 = arith.constant 0.000000e+00 : f32
    %204 = vector.broadcast %cst_90 : f32 to vector<8x128xf32>
    %205 = arith.maximumf %203, %204 : vector<8x128xf32>
    %206 = arith.maximumf %25, %45 : vector<8x128xf32>
    %207 = arith.maximumf %206, %65 : vector<8x128xf32>
    %208 = arith.maximumf %207, %85 : vector<8x128xf32>
    %209 = arith.maximumf %208, %105 : vector<8x128xf32>
    %210 = arith.maximumf %209, %125 : vector<8x128xf32>
    %211 = arith.maximumf %210, %145 : vector<8x128xf32>
    %212 = arith.maximumf %211, %165 : vector<8x128xf32>
    %213 = arith.maximumf %212, %185 : vector<8x128xf32>
    %214 = arith.maximumf %213, %205 : vector<8x128xf32>
    %215 = arith.subf %25, %214 : vector<8x128xf32>
    %216 = math.exp %215 : vector<8x128xf32>
    %217 = arith.subf %45, %214 : vector<8x128xf32>
    %218 = math.exp %217 : vector<8x128xf32>
    %219 = arith.subf %65, %214 : vector<8x128xf32>
    %220 = math.exp %219 : vector<8x128xf32>
    %221 = arith.subf %85, %214 : vector<8x128xf32>
    %222 = math.exp %221 : vector<8x128xf32>
    %223 = arith.subf %105, %214 : vector<8x128xf32>
    %224 = math.exp %223 : vector<8x128xf32>
    %225 = arith.subf %125, %214 : vector<8x128xf32>
    %226 = math.exp %225 : vector<8x128xf32>
    %227 = arith.subf %145, %214 : vector<8x128xf32>
    %228 = math.exp %227 : vector<8x128xf32>
    %229 = arith.subf %165, %214 : vector<8x128xf32>
    %230 = math.exp %229 : vector<8x128xf32>
    %231 = arith.subf %185, %214 : vector<8x128xf32>
    %232 = math.exp %231 : vector<8x128xf32>
    %233 = arith.subf %205, %214 : vector<8x128xf32>
    %234 = math.exp %233 : vector<8x128xf32>
    %235 = arith.addf %216, %218 : vector<8x128xf32>
    %236 = arith.addf %235, %220 : vector<8x128xf32>
    %237 = arith.addf %236, %222 : vector<8x128xf32>
    %238 = arith.addf %237, %224 : vector<8x128xf32>
    %239 = arith.addf %238, %226 : vector<8x128xf32>
    %240 = arith.addf %239, %228 : vector<8x128xf32>
    %241 = arith.addf %240, %230 : vector<8x128xf32>
    %242 = arith.addf %241, %232 : vector<8x128xf32>
    %243 = arith.addf %242, %234 : vector<8x128xf32>
    %244 = arith.mulf %19, %216 : vector<8x128xf32>
    %245 = arith.mulf %39, %218 : vector<8x128xf32>
    %246 = arith.addf %244, %245 : vector<8x128xf32>
    %247 = arith.mulf %59, %220 : vector<8x128xf32>
    %248 = arith.addf %246, %247 : vector<8x128xf32>
    %249 = arith.mulf %79, %222 : vector<8x128xf32>
    %250 = arith.addf %248, %249 : vector<8x128xf32>
    %251 = arith.mulf %99, %224 : vector<8x128xf32>
    %252 = arith.addf %250, %251 : vector<8x128xf32>
    %253 = arith.mulf %119, %226 : vector<8x128xf32>
    %254 = arith.addf %252, %253 : vector<8x128xf32>
    %255 = arith.mulf %139, %228 : vector<8x128xf32>
    %256 = arith.addf %254, %255 : vector<8x128xf32>
    %257 = arith.mulf %159, %230 : vector<8x128xf32>
    %258 = arith.addf %256, %257 : vector<8x128xf32>
    %259 = arith.mulf %179, %232 : vector<8x128xf32>
    %260 = arith.addf %258, %259 : vector<8x128xf32>
    %261 = arith.mulf %199, %234 : vector<8x128xf32>
    %262 = arith.addf %260, %261 : vector<8x128xf32>
    %263 = tpu.reciprocal %243 {approx = true} : vector<8x128xf32> -> vector<8x128xf32>
    %264 = arith.mulf %262, %263 : vector<8x128xf32>
    %c0_91 = arith.constant 0 : index
    %c0_92 = arith.constant 0 : index
    %265 = vector.load %arg8[%c0_91, %c0_92] : memref<8x128xf32, #tpu.memory_space<vmem>>, vector<8x128xf32>
    tpu.vector_store %arg8[%c0_91, %c0_92], %264 {strides = array<i32>} : memref<8x128xf32, #tpu.memory_space<vmem>>, vector<8x128xf32>,
    return
  }
  func.func @transform_0(%arg0: i32) -> (i32, i32, i32) {
    %c0_i32 = arith.constant 0 : i32
    %c0_i32_0 = arith.constant 0 : i32
    %c0_i32_1 = arith.constant 0 : i32
    return %c0_i32, %arg0, %c0_i32_0 : i32, i32, i32
  }
  func.func @transform_1(%arg0: i32) -> (i32, i32) {
    %c0_i32 = arith.constant 0 : i32
    %c0_i32_0 = arith.constant 0 : i32
    %c0_i32_1 = arith.constant 0 : i32
    return %c0_i32, %c0_i32_0 : i32, i32
  }
  func.func @transform_2(%arg0: i32) -> (i32, i32) {
    %c0_i32 = arith.constant 0 : i32
    %c0_i32_0 = arith.constant 0 : i32
    %c0_i32_1 = arith.constant 0 : i32
    return %c0_i32, %c0_i32_0 : i32, i32
  }
  func.func @transform_3(%arg0: i32) -> (i32, i32) {
    %c0_i32 = arith.constant 0 : i32
    %c0_i32_0 = arith.constant 0 : i32
    %c0_i32_1 = arith.constant 0 : i32
    return %c0_i32, %c0_i32_0 : i32, i32
  }
  func.func @transform_4(%arg0: i32) -> (i32, i32) {
    %c0_i32 = arith.constant 0 : i32
    %c0_i32_0 = arith.constant 0 : i32
    %c0_i32_1 = arith.constant 0 : i32
    return %c0_i32, %c0_i32_0 : i32, i32
  }
  func.func @transform_5(%arg0: i32) -> (i32, i32) {
    %c0_i32 = arith.constant 0 : i32
    %c0_i32_0 = arith.constant 0 : i32
    %c0_i32_1 = arith.constant 0 : i32
    return %c0_i32, %c0_i32_0 : i32, i32
  }
  func.func @transform_6(%arg0: i32) -> (i32, i32) {
    %c0_i32 = arith.constant 0 : i32
    %c0_i32_0 = arith.constant 0 : i32
    %c0_i32_1 = arith.constant 0 : i32
    return %c0_i32, %c0_i32_0 : i32, i32
  }
  func.func @transform_7(%arg0: i32) -> (i32, i32) {
    %c0_i32 = arith.constant 0 : i32
    %c0_i32_0 = arith.constant 0 : i32
    return %arg0, %c0_i32 : i32, i32
  }
}

</mosaic_0001>

<bundles_post_ra>
// kernel: tpu_custom_call.1
= control target key start
LH: loop header
LB: loop body
LE: loop exit
PB: predicated region body
PF: predicated region fallthrough
CT: control target
= control target key end

     0   :  { %12 = vsyncpa [#allocation3], 0  ;;  %s3708_s0 = inlined_call_operand.hbm [shape: f32[10,8,128], index: 0, kind: input, shape index: {}]   ;;  %s3709_s1 = inlined_call_operand.hbm [shape: bf16[128,128], index: 1, kind: input, shape index: {}]   ;;  %s3710_s2 = inlined_call_operand.vmem [shape: f32[1,128], index: 2, kind: input, shape index: {}]   ;;  %s3711_s3 = inlined_call_operand.hbm [shape: bf16[128,128], index: 3, kind: input, shape index: {}]   ;;  %s3712_s4 = inlined_call_operand.vmem [shape: f32[1,128], index: 4, kind: input, shape index: {}]   ;;  %s3713_s5 = inlined_call_operand.hbm [shape: bf16[128,128], index: 5, kind: input, shape index: {}]   ;;  %s3714_s6 = inlined_call_operand.vmem [shape: f32[1,128], index: 6, kind: input, shape index: {}]   ;;  %s3715_s7 = inlined_call_operand.hbm [shape: f32[8,128], index: 7, kind: output, shape index: {}]  }
   0x1   :  { %13 = vsyncpa [#allocation6], 0 }
   0x2   :  { %14 = vsyncpa [#allocation9], 0 }
   0x3   :  { %15 = vsyncpa [#allocation4], 0  ;;  %s2761_s24 = smov [#allocation5]   ;;  %s2643_s28 = scalar_lea.hbm %s3709_s1, 1024 }
   0x4   :  { %s33_s25 = sshll.u32 %s2761_s24, 4  ;;  %p2644_p0 = scmp.ne.s32.totalorder %s3709_s1, %s2643_s28  ;;  %s34_s25 = int_to_ptr.vmem [resolvable:$true] %s33_s25 }
   0x5   :  { %p2647_p1 = scmp.lt.u32.totalorder %s2643_s28, %s3709_s1 }
   0x7   :  { %p2649_p2 = pnand %p2647_p1, %p2644_p0 }
   0x9   :  { %2652 = shalt.err (!%p2649_p2)
}
   0xa   :  { %s2653_s10 = scalar_lea.vmem %s34_s25, 1024  ;;  %p2658_p4 = scmp.lt.s32.totalorder %s34_s25, %s34_s25 }
   0xb   :  { %p2654_p3 = scmp.ne.s32.totalorder %s34_s25, %s2653_s10  ;;  %p2659_p5 = scmp.lt.s32.totalorder %s2653_s10, %s2653_s10 }
   0xd   :  { %p2660_p6 = por %p2659_p5, %p2658_p4 }
   0xf   :  { %p2661_p7 = pnand %p2660_p6, %p2654_p3 }
  0x11   :  { %2664 = shalt.err (!%p2661_p7)
}
  0x12   :  { %s2762_s11 = smov 64   ;;  %s2763_s12 = smov 4  }
  0x13   :  { %39 = dma.hbm_to_vmem [thread:$0]  %s3709_s1, 1024, %s34_s25, [#allocation6], %s2762_s11, %s2762_s11, %s2763_s12  }
  0x14   :  { %s2764_s15 = smov [#allocation2]   ;;  %s2665_s19 = scalar_lea.hbm %s3708_s0, 1280 }
  0x15   :  { %s21_s16 = sshll.u32 %s2764_s15, 4  ;;  %p2666_p8 = scmp.ne.s32.totalorder %s3708_s0, %s2665_s19  ;;  %s22_s16 = int_to_ptr.vmem [resolvable:$true] %s21_s16 }
  0x16   :  { %p2669_p9 = scmp.lt.u32.totalorder %s2665_s19, %s3708_s0 }
  0x18   :  { %p2671_p10 = pnand %p2669_p9, %p2666_p8 }
  0x1a   :  { %2674 = shalt.err (!%p2671_p10)
}
  0x1b   :  { %s2675_s24 = scalar_lea.vmem %s22_s16, 1280  ;;  %p2680_p12 = scmp.lt.s32.totalorder %s22_s16, %s22_s16 }
  0x1c   :  { %p2676_p11 = scmp.ne.s32.totalorder %s22_s16, %s2675_s24  ;;  %p2681_p13 = scmp.lt.s32.totalorder %s2675_s24, %s2675_s24 }
  0x1e   :  { %p2682_p0 = por %p2681_p13, %p2680_p12 }
  0x20   :  { %p2683_p1 = pnand %p2682_p0, %p2676_p11 }
  0x22   :  { %2686 = shalt.err (!%p2683_p1)
}
  0x23   :  { %s2765_s1 = smov 128   ;;  %s2766_s25 = smov 8  }
  0x24   :  { %27 = dma.hbm_to_vmem [thread:$0]  %s3708_s0, 1280, %s22_s16, [#allocation3], %s2765_s1, %s2765_s1, %s2766_s25  }
  0x25   :  { %s2767_s28 = smov [#allocation7]   ;;  %s2768_s30 = smov [#allocation8]  }
  0x26   :  { %s47_s29 = sshll.u32 %s2767_s28, 4  ;;  %s61_s8 = sshll.u32 %s2768_s30, 4  ;;  %s48_s29 = int_to_ptr.vmem [resolvable:$true] %s47_s29  ;;  %s2839_s8 = int_to_ptr.vmem [resolvable:$true] %s61_s8 }
  0x27   :  { %s2687_s13 = scalar_lea.hbm %s3711_s3, 1024 }
  0x28   :  { %p2688_p2 = scmp.ne.s32.totalorder %s3711_s3, %s2687_s13  ;;  %p2691_p3 = scmp.lt.u32.totalorder %s2687_s13, %s3711_s3 }
  0x2a   :  { %p2693_p4 = pnand %p2691_p3, %p2688_p2 }
  0x2c   :  { %2696 = shalt.err (!%p2693_p4)
}
  0x2d   :  { %s2697_s0 = scalar_lea.vmem %s48_s29, 1024  ;;  %p2702_p6 = scmp.lt.s32.totalorder %s48_s29, %s48_s29 }
  0x2e   :  { %p2698_p5 = scmp.ne.s32.totalorder %s48_s29, %s2697_s0  ;;  %p2703_p7 = scmp.lt.s32.totalorder %s2697_s0, %s2697_s0 }
  0x30   :  { %p2704_p8 = por %p2703_p7, %p2702_p6 }
  0x32   :  { %p2705_p9 = pnand %p2704_p8, %p2698_p5 }
  0x34   :  { %2708 = shalt.err (!%p2705_p9)
}
  0x35   :  { %53 = dma.hbm_to_vmem [thread:$0]  %s3711_s3, 1024, %s48_s29, [#allocation6], %s2762_s11, %s2762_s11, %s2763_s12  }
  0x36   :  { %s2709_s22 = scalar_lea.hbm %s3713_s5, 1024 }
  0x37   :  { %p2710_p10 = scmp.ne.s32.totalorder %s3713_s5, %s2709_s22  ;;  %p2713_p11 = scmp.lt.u32.totalorder %s2709_s22, %s3713_s5 }
  0x39   :  { %p2715_p12 = pnand %p2713_p11, %p2710_p10 }
  0x3b   :  { %2718 = shalt.err (!%p2715_p12)
}
  0x3c   :  { %s2719_s26 = scalar_lea.vmem %s2839_s8, 1024  ;;  %p2724_p0 = scmp.lt.s32.totalorder %s2839_s8, %s2839_s8 }
  0x3d   :  { %p2720_p13 = scmp.ne.s32.totalorder %s2839_s8, %s2719_s26  ;;  %p2725_p1 = scmp.lt.s32.totalorder %s2719_s26, %s2719_s26 }
  0x3f   :  { %p2726_p2 = por %p2725_p1, %p2724_p0 }
  0x41   :  { %p2727_p3 = pnand %p2726_p2, %p2720_p13 }
  0x43   :  { %2730 = shalt.err (!%p2727_p3)
}
  0x44   :  { %67 = dma.hbm_to_vmem [thread:$0]  %s3713_s5, 1024, %s2839_s8, [#allocation9], %s2762_s11, %s2762_s11, %s2763_s12  }
  0x45   :  { %2753 = dma.done.wait [#allocation3], 1280  }
  0x46   :  { %2754 = vsyncadd [#allocation3], 4294966016 }
  0x47   :  { %2755 = dma.done.wait [#allocation6], 2048  }
  0x48   :  { %2756 = vsyncadd [#allocation6], 4294965248 }
  0x49   :  { %2757 = dma.done.wait [#allocation9], 1024  }
  0x4a   :  { %2758 = vsyncadd [#allocation9], 4294966272  ;;  %v2769_v0 = vmov 0.0   ;;  %vm2770_vm0 = vmmov 0   ;;  %v2882_v1 = vld [vmem:[#allocation5] sm:$0xff]   ;;  %v2885_v2 = vld [vmem:[#allocation5 + $0x8] sm:$0xff]  }
  0x4b   :  { %1959 = vmatprep.subr.bf16.mxu0 %v2769_v0  ;;  %1975 = vmatprep.mubr.msk.bf16.mxu0 %vm2770_vm0, %v2769_v0  ;;  %v2889_v3 = vld [vmem:[#allocation5 + $0x10] sm:$0xff]   ;;  %v2892_v4 = vld [vmem:[#allocation7] sm:$0xff]   ;;  %v2895_v5 = vld [vmem:[#allocation5 + $0x18] sm:$0xff]  }
  0x4c   :  { %1979 = vmatprep.subr.bf16.mxu1 %v2769_v0  ;;  %1995 = vmatprep.mubr.msk.bf16.mxu1 %vm2770_vm0, %v2769_v0  ;;  %v2899_v6 = vld [vmem:[#allocation7 + $0x8] sm:$0xff]   ;;  %v2903_v7 = vld [vmem:[#allocation5 + $0x20] sm:$0xff]   ;;  %v2907_v8 = vld [vmem:[#allocation7 + $0x10] sm:$0xff]  }
  0x4d   :  { %1960 = vmatpush3.bf16.msra.mxu0 %v2882_v1  ;;  %1980 = vmatpush3.bf16.msra.mxu1 %v2892_v4  ;;  %v2909_v9 = vld [vmem:[#allocation5 + $0x28] sm:$0xff]   ;;  %v2912_v10 = vld [vmem:[#allocation7 + $0x18] sm:$0xff]   ;;  %v2919_v11 = vld [vmem:[#allocation5 + $0x30] sm:$0xff]  }
  0x4e   :  { %1961 = vmatprep.subr.bf16.mxu0 %v2769_v0  ;;  %1981 = vmatprep.subr.bf16.mxu1 %v2769_v0  ;;  %v2923_v12 = vld [vmem:[#allocation7 + $0x20] sm:$0xff]   ;;  %v2927_v13 = vld [vmem:[#allocation5 + $0x38] sm:$0xff]   ;;  %v134_v14 = vld [vmem:[#allocation2] sm:$0xff] }
  0x4f   :  { %v2931_v15 = vld [vmem:[#allocation7 + $0x28] sm:$0xff]   ;;  %v135_v16 = vpack.c.bf16 %v134_v14, %v134_v14  ;;  %v2936_v17 = vld [vmem:[#allocation7 + $0x30] sm:$0xff]   ;;  %v2944_v18 = vld [vmem:[#allocation7 + $0x38] sm:$0xff]  }
  0x50   :  { %v2948_v19 = vld [vmem:[#allocation8] sm:$0xff]   ;;  %v2951_v20 = vld [vmem:[#allocation8 + $0x8] sm:$0xff]   ;;  %v2955_v21 = vld [vmem:[#allocation8 + $0x10] sm:$0xff]  }
  0x51   :  { %1962 = vmatpush3.bf16.msra.mxu0 %v2885_v2  ;;  %1982 = vmatpush3.bf16.msra.mxu1 %v2899_v6  ;;  %v2959_v22 = vld [vmem:[#allocation8 + $0x18] sm:$0xff]   ;;  %v2963_v23 = vld [vmem:[#allocation8 + $0x20] sm:$0xff]   ;;  %v2967_v24 = vld [vmem:[#allocation8 + $0x28] sm:$0xff]  }
  0x52   :  { %1963 = vmatprep.subr.bf16.mxu0 %v2769_v0  ;;  %1983 = vmatprep.subr.bf16.mxu1 %v2769_v0  ;;  %v2971_v25 = vld [vmem:[#allocation8 + $0x30] sm:$0xff]   ;;  %v424_v34 = vld [vmem:[#allocation2 + $0x8] sm:$0xff]  ;;  %v552_v52 = vld [vmem:[#allocation2 + $0x10] sm:$0xff] }
  0x53   :  { %v2979_v26 = vld [vmem:[%s3710_s2] ss:$0 sm:$0xff]  ;;  %v425_v35 = vpack.c.bf16 %v424_v34, %v424_v34  ;;  %v3016_v36 = vld [vmem:[#allocation8 + $0x38] sm:$0xff]   ;;  %v553_v53 = vpack.c.bf16 %v552_v52, %v552_v52 }
  0x54   :  { %v3025_v37 = vld [vmem:[%s3712_s4] ss:$0 sm:$0xff] }
  0x55   :  { %1964 = vmatpush3.bf16.msra.mxu0 %v2889_v3  ;;  %1984 = vmatpush3.bf16.msra.mxu1 %v2907_v8 }
  0x56   :  { %1965 = vmatprep.subr.bf16.mxu0 %v2769_v0  ;;  %1985 = vmatprep.subr.bf16.mxu1 %v2769_v0 }
  0x59   :  { %1966 = vmatpush3.bf16.msra.mxu0 %v2895_v5  ;;  %1986 = vmatpush3.bf16.msra.mxu1 %v2912_v10 }
  0x5a   :  { %1967 = vmatprep.subr.bf16.mxu0 %v2769_v0  ;;  %1987 = vmatprep.subr.bf16.mxu1 %v2769_v0 }
  0x5d   :  { %1968 = vmatpush3.bf16.msra.mxu0 %v2903_v7  ;;  %1988 = vmatpush3.bf16.msra.mxu1 %v2923_v12 }
  0x5e   :  { %1969 = vmatprep.subr.bf16.mxu0 %v2769_v0  ;;  %1989 = vmatprep.subr.bf16.mxu1 %v2769_v0 }
  0x61   :  { %1970 = vmatpush3.bf16.msra.mxu0 %v2909_v9  ;;  %1990 = vmatpush3.bf16.msra.mxu1 %v2931_v15 }
  0x62   :  { %1971 = vmatprep.subr.bf16.mxu0 %v2769_v0  ;;  %1991 = vmatprep.subr.bf16.mxu1 %v2769_v0 }
  0x65   :  { %1972 = vmatpush3.bf16.msra.mxu0 %v2919_v11  ;;  %1992 = vmatpush3.bf16.msra.mxu1 %v2936_v17 }
  0x66   :  { %1973 = vmatprep.subr.bf16.mxu0 %v2769_v0  ;;  %1993 = vmatprep.subr.bf16.mxu1 %v2769_v0 }
  0x69   :  { %1974 = vmatpush3.bf16.msra.mxu0 %v2927_v13  ;;  %1994 = vmatpush3.bf16.msra.mxu1 %v2944_v18 }
  0x6a   :  { %1999 = vmatprep.subr.bf16.mxu0 %v2769_v0  ;;  %2019 = vmatprep.subr.bf16.mxu1 %v2769_v0 }
  0x6c   :  { %1976 = vmatmul.mubr.bf16.vlgmr.msra.gmra.mrb[0].mxu0 %v135_v16 }
  0x6d   :  { %2015 = vmatprep.mubr.msk.bf16.mxu0 %vm2770_vm0, %v2769_v0  ;;  %2000 = vmatpush3.bf16.msra.mxu0 %v2948_v19 }
  0x6e   :  { %2001 = vmatprep.subr.bf16.mxu0 %v2769_v0 }
  0x71   :  { %2002 = vmatpush3.bf16.msra.mxu0 %v2951_v20 }
  0x72   :  { %2003 = vmatprep.subr.bf16.mxu0 %v2769_v0 }
  0x75   :  { %2004 = vmatpush3.bf16.msra.mxu0 %v2955_v21 }
  0x76   :  { %2005 = vmatprep.subr.bf16.mxu0 %v2769_v0 }
  0x79   :  { %2006 = vmatpush3.bf16.msra.mxu0 %v2959_v22 }
  0x7a   :  { %2007 = vmatprep.subr.bf16.mxu0 %v2769_v0 }
  0x7d   :  { %2008 = vmatpush3.bf16.msra.mxu0 %v2963_v23 }
  0x7e   :  { %2009 = vmatprep.subr.bf16.mxu0 %v2769_v0 }
  0x81   :  { %2010 = vmatpush3.bf16.msra.mxu0 %v2967_v24 }
  0x82   :  { %2011 = vmatprep.subr.bf16.mxu0 %v2769_v0 }
  0x85   :  { %2012 = vmatpush3.bf16.msra.mxu0 %v2971_v25 }
  0x86   :  { %2013 = vmatprep.subr.bf16.mxu0 %v2769_v0 }
  0x89   :  { %2014 = vmatpush3.bf16.msra.mxu0 %v3016_v36 }
  0x8a   :  { %2039 = vmatprep.subr.bf16.mxu0 %v2769_v0 }
 0x13f   :  { %v224_v27 = vpop.f32.mrb[0].mxu0 }
 0x140   :  { %v225_v28 = vadd.f32 %v2979_v26, %v224_v27  ;;  %v1977_v29 = vpop.f32.mrb[1].mxu0 }
 0x141   :  { %v227_v30 = vpop.f32.mrb[2].mxu0 }
 0x142   :  { %v230_v31 = vmax.f32 %v225_v28, 0.0  ;;  %v1978_v32 = vpop.f32.mrb[3].mxu0 }
 0x144   :  { %v231_v33 = vpack.c.bf16 %v230_v31, %v230_v31 }
 0x146   :  { %1996 = vmatmul.mubr.bf16.vlgmr.msra.gmra.mrb[0].mxu1 %v231_v33  ;;  %v680_v33 = vld [vmem:[#allocation2 + $0x18] sm:$0xff] }
 0x147   :  { %2020 = vmatpush3.bf16.msra.mxu1 %v2882_v1  ;;  %2035 = vmatprep.mubr.msk.bf16.mxu1 %vm2770_vm0, %v2769_v0  ;;  %v681_v34 = vpack.c.bf16 %v680_v33, %v680_v33 }
 0x148   :  { %2021 = vmatprep.subr.bf16.mxu1 %v2769_v0 }
 0x14b   :  { %2022 = vmatpush3.bf16.msra.mxu1 %v2885_v2 }
 0x14c   :  { %2023 = vmatprep.subr.bf16.mxu1 %v2769_v0 }
 0x14f   :  { %2024 = vmatpush3.bf16.msra.mxu1 %v2889_v3 }
 0x150   :  { %2025 = vmatprep.subr.bf16.mxu1 %v2769_v0 }
 0x153   :  { %2026 = vmatpush3.bf16.msra.mxu1 %v2895_v5 }
 0x154   :  { %2027 = vmatprep.subr.bf16.mxu1 %v2769_v0 }
 0x157   :  { %2028 = vmatpush3.bf16.msra.mxu1 %v2903_v7 }
 0x158   :  { %2029 = vmatprep.subr.bf16.mxu1 %v2769_v0 }
 0x15b   :  { %2030 = vmatpush3.bf16.msra.mxu1 %v2909_v9 }
 0x15c   :  { %2031 = vmatprep.subr.bf16.mxu1 %v2769_v0 }
 0x15f   :  { %2032 = vmatpush3.bf16.msra.mxu1 %v2919_v11 }
 0x160   :  { %2033 = vmatprep.subr.bf16.mxu1 %v2769_v0 }
 0x163   :  { %2034 = vmatpush3.bf16.msra.mxu1 %v2927_v13 }
 0x164   :  { %2059 = vmatprep.subr.bf16.mxu1 %v2769_v0 }
 0x166   :  { %2036 = vmatmul.mubr.bf16.vlgmr.msra.gmra.mrb[4].mxu1 %v425_v35  ;;  %v3152_v35 = vld [vmem:[%s3714_s6] ss:$0 sm:$0xff] }
 0x167   :  { %2060 = vmatpush3.bf16.msra.mxu1 %v2948_v19  ;;  %2075 = vmatprep.mubr.msk.bf16.mxu1 %vm2770_vm0, %v2769_v0 }
 0x168   :  { %2061 = vmatprep.subr.bf16.mxu1 %v2769_v0 }
 0x16b   :  { %2062 = vmatpush3.bf16.msra.mxu1 %v2951_v20 }
 0x16c   :  { %2063 = vmatprep.subr.bf16.mxu1 %v2769_v0 }
 0x16f   :  { %2064 = vmatpush3.bf16.msra.mxu1 %v2955_v21 }
 0x170   :  { %2065 = vmatprep.subr.bf16.mxu1 %v2769_v0 }
 0x173   :  { %2066 = vmatpush3.bf16.msra.mxu1 %v2959_v22 }
 0x174   :  { %2067 = vmatprep.subr.bf16.mxu1 %v2769_v0 }
 0x177   :  { %2068 = vmatpush3.bf16.msra.mxu1 %v2963_v23 }
 0x178   :  { %2069 = vmatprep.subr.bf16.mxu1 %v2769_v0 }
 0x17b   :  { %2070 = vmatpush3.bf16.msra.mxu1 %v2967_v24 }
 0x17c   :  { %2071 = vmatprep.subr.bf16.mxu1 %v2769_v0 }
 0x17f   :  { %2072 = vmatpush3.bf16.msra.mxu1 %v2971_v25 }
 0x180   :  { %2073 = vmatprep.subr.bf16.mxu1 %v2769_v0 }
 0x183   :  { %2074 = vmatpush3.bf16.msra.mxu1 %v3016_v36 }
 0x184   :  { %2099 = vmatprep.subr.bf16.mxu1 %v2769_v0 }
 0x219   :  { %v320_v38 = vpop.f32.mrb[0].mxu1 }
 0x21a   :  { %v321_v39 = vadd.f32 %v3025_v37, %v320_v38  ;;  %v1997_v40 = vpop.f32.mrb[1].mxu1 }
 0x21b   :  { %v323_v41 = vpop.f32.mrb[2].mxu1 }
 0x21c   :  { %v3028_v42 = vmax.f32 %v321_v39, 0.0  ;;  %v1998_v43 = vpop.f32.mrb[3].mxu1 }
 0x21e   :  { %v327_v44 = vpack.c.bf16 %v3028_v42, %v3028_v42 }
 0x220   :  { %2016 = vmatmul.mubr.bf16.vlgmr.msra.gmra.mrb[4].mxu0 %v327_v44 }
 0x221   :  { %2040 = vmatpush3.bf16.msra.mxu0 %v2892_v4  ;;  %2055 = vmatprep.mubr.msk.bf16.mxu0 %vm2770_vm0, %v2769_v0 }
 0x222   :  { %2041 = vmatprep.subr.bf16.mxu0 %v2769_v0 }
 0x225   :  { %2042 = vmatpush3.bf16.msra.mxu0 %v2899_v6 }
 0x226   :  { %2043 = vmatprep.subr.bf16.mxu0 %v2769_v0 }
 0x229   :  { %2044 = vmatpush3.bf16.msra.mxu0 %v2907_v8 }
 0x22a   :  { %2045 = vmatprep.subr.bf16.mxu0 %v2769_v0 }
 0x22d   :  { %2046 = vmatpush3.bf16.msra.mxu0 %v2912_v10 }
 0x22e   :  { %2047 = vmatprep.subr.bf16.mxu0 %v2769_v0 }
 0x231   :  { %2048 = vmatpush3.bf16.msra.mxu0 %v2923_v12 }
 0x232   :  { %2049 = vmatprep.subr.bf16.mxu0 %v2769_v0 }
 0x235   :  { %2050 = vmatpush3.bf16.msra.mxu0 %v2931_v15 }
 0x236   :  { %2051 = vmatprep.subr.bf16.mxu0 %v2769_v0 }
 0x239   :  { %v460_v45 = vpop.f32.mrb[4].mxu1  ;;  %2052 = vmatpush3.bf16.msra.mxu0 %v2936_v17 }
 0x23a   :  { %v461_v46 = vadd.f32 %v2979_v26, %v460_v45  ;;  %v2037_v47 = vpop.f32.mrb[5].mxu1  ;;  %2053 = vmatprep.subr.bf16.mxu0 %v2769_v0 }
 0x23b   :  { %v463_v48 = vpop.f32.mrb[6].mxu1 }
 0x23c   :  { %v466_v49 = vmax.f32 %v461_v46, 0.0  ;;  %v2038_v50 = vpop.f32.mrb[7].mxu1 }
 0x23d   :  { %2054 = vmatpush3.bf16.msra.mxu0 %v2944_v18 }
 0x23e   :  { %v467_v51 = vpack.c.bf16 %v466_v49, %v466_v49  ;;  %2079 = vmatprep.subr.bf16.mxu0 %v2769_v0 }
 0x240   :  { %2056 = vmatmul.mubr.bf16.vlgmr.msra.gmra.mrb[8].mxu0 %v467_v51 }
 0x241   :  { %2080 = vmatpush3.bf16.msra.mxu0 %v2882_v1  ;;  %2095 = vmatprep.mubr.msk.bf16.mxu0 %vm2770_vm0, %v2769_v0 }
 0x242   :  { %2081 = vmatprep.subr.bf16.mxu0 %v2769_v0 }
 0x245   :  { %2082 = vmatpush3.bf16.msra.mxu0 %v2885_v2 }
 0x246   :  { %2083 = vmatprep.subr.bf16.mxu0 %v2769_v0 }
 0x249   :  { %2084 = vmatpush3.bf16.msra.mxu0 %v2889_v3 }
 0x24a   :  { %2085 = vmatprep.subr.bf16.mxu0 %v2769_v0 }
 0x24d   :  { %2086 = vmatpush3.bf16.msra.mxu0 %v2895_v5 }
 0x24e   :  { %2087 = vmatprep.subr.bf16.mxu0 %v2769_v0 }
 0x251   :  { %2088 = vmatpush3.bf16.msra.mxu0 %v2903_v7 }
 0x252   :  { %2089 = vmatprep.subr.bf16.mxu0 %v2769_v0 }
 0x255   :  { %2090 = vmatpush3.bf16.msra.mxu0 %v2909_v9 }
 0x256   :  { %2091 = vmatprep.subr.bf16.mxu0 %v2769_v0 }
 0x259   :  { %2092 = vmatpush3.bf16.msra.mxu0 %v2919_v11 }
 0x25a   :  { %2093 = vmatprep.subr.bf16.mxu0 %v2769_v0 }
 0x25d   :  { %2094 = vmatpush3.bf16.msra.mxu0 %v2927_v13 }
 0x25e   :  { %2119 = vmatprep.subr.bf16.mxu0 %v2769_v0 }
 0x260   :  { %2096 = vmatmul.mubr.bf16.vlgmr.msra.gmra.mrb[12].mxu0 %v553_v53 }
 0x261   :  { %2120 = vmatpush3.bf16.msra.mxu0 %v2948_v19  ;;  %2135 = vmatprep.mubr.msk.bf16.mxu0 %vm2770_vm0, %v2769_v0 }
 0x262   :  { %2121 = vmatprep.subr.bf16.mxu0 %v2769_v0 }
 0x265   :  { %2122 = vmatpush3.bf16.msra.mxu0 %v2951_v20 }
 0x266   :  { %2123 = vmatprep.subr.bf16.mxu0 %v2769_v0 }
 0x269   :  { %2124 = vmatpush3.bf16.msra.mxu0 %v2955_v21 }
 0x26a   :  { %2125 = vmatprep.subr.bf16.mxu0 %v2769_v0 }
 0x26d   :  { %2126 = vmatpush3.bf16.msra.mxu0 %v2959_v22 }
 0x26e   :  { %2127 = vmatprep.subr.bf16.mxu0 %v2769_v0 }
 0x271   :  { %2128 = vmatpush3.bf16.msra.mxu0 %v2963_v23 }
 0x272   :  { %2129 = vmatprep.subr.bf16.mxu0 %v2769_v0 }
 0x275   :  { %2130 = vmatpush3.bf16.msra.mxu0 %v2967_v24 }
 0x276   :  { %2131 = vmatprep.subr.bf16.mxu0 %v2769_v0 }
 0x279   :  { %2132 = vmatpush3.bf16.msra.mxu0 %v2971_v25 }
 0x27a   :  { %2133 = vmatprep.subr.bf16.mxu0 %v2769_v0 }
 0x27d   :  { %2134 = vmatpush3.bf16.msra.mxu0 %v3016_v36 }
 0x27e   :  { %2159 = vmatprep.subr.bf16.mxu0 %v2769_v0 }
 0x2f3   :  { %v3087_v54 = vpop.f32.mrb[4].mxu0 }
 0x2f4   :  { %v2017_v55 = vpop.f32.mrb[5].mxu0  ;;  %v3156_v38 = vadd.f32 %v3152_v35, %v3087_v54 }
 0x2f5   :  { %v419_v56 = vpop.f32.mrb[6].mxu0 }
 0x2f6   :  { %v2018_v57 = vpop.f32.mrb[7].mxu0  ;;  %v422_v44 = vmax.f32 %v3156_v38, 0.0 }
 0x313   :  { %v502_v58 = vpop.f32.mrb[8].mxu0 }
 0x314   :  { %v503_v59 = vadd.f32 %v3025_v37, %v502_v58  ;;  %v2057_v60 = vpop.f32.mrb[9].mxu0 }
 0x315   :  { %v505_v61 = vpop.f32.mrb[10].mxu0 }
 0x316   :  { %v3090_v62 = vmax.f32 %v503_v59, 0.0  ;;  %v2058_v63 = vpop.f32.mrb[11].mxu0 }
 0x317   :  { %v808_v63 = vld [vmem:[#allocation2 + $0x20] sm:$0xff] }
 0x318   :  { %v509_v14 = vpack.c.bf16 %v3090_v62, %v3090_v62 }
 0x31a   :  { %2076 = vmatmul.mubr.bf16.vlgmr.msra.gmra.mrb[8].mxu1 %v509_v14  ;;  %v809_v14 = vpack.c.bf16 %v808_v63, %v808_v63 }
 0x31b   :  { %2100 = vmatpush3.bf16.msra.mxu1 %v2892_v4  ;;  %2115 = vmatprep.mubr.msk.bf16.mxu1 %vm2770_vm0, %v2769_v0 }
 0x31c   :  { %2101 = vmatprep.subr.bf16.mxu1 %v2769_v0 }
 0x31f   :  { %2102 = vmatpush3.bf16.msra.mxu1 %v2899_v6 }
 0x320   :  { %2103 = vmatprep.subr.bf16.mxu1 %v2769_v0 }
 0x323   :  { %2104 = vmatpush3.bf16.msra.mxu1 %v2907_v8 }
 0x324   :  { %2105 = vmatprep.subr.bf16.mxu1 %v2769_v0 }
 0x327   :  { %2106 = vmatpush3.bf16.msra.mxu1 %v2912_v10 }
 0x328   :  { %2107 = vmatprep.subr.bf16.mxu1 %v2769_v0 }
 0x32b   :  { %2108 = vmatpush3.bf16.msra.mxu1 %v2923_v12 }
 0x32c   :  { %2109 = vmatprep.subr.bf16.mxu1 %v2769_v0 }
 0x32f   :  { %2110 = vmatpush3.bf16.msra.mxu1 %v2931_v15 }
 0x330   :  { %2111 = vmatprep.subr.bf16.mxu1 %v2769_v0 }
 0x333   :  { %2112 = vmatpush3.bf16.msra.mxu1 %v2936_v17  ;;  %v588_v16 = vpop.f32.mrb[12].mxu0 }
 0x334   :  { %v589_v27 = vadd.f32 %v2979_v26, %v588_v16  ;;  %v2097_v28 = vpop.f32.mrb[13].mxu0  ;;  %2113 = vmatprep.subr.bf16.mxu1 %v2769_v0 }
 0x335   :  { %v591_v29 = vpop.f32.mrb[14].mxu0 }
 0x336   :  { %v594_v30 = vmax.f32 %v589_v27, 0.0  ;;  %v2098_v31 = vpop.f32.mrb[15].mxu0 }
 0x337   :  { %2114 = vmatpush3.bf16.msra.mxu1 %v2944_v18 }
 0x338   :  { %v595_v32 = vpack.c.bf16 %v594_v30, %v594_v30  ;;  %2139 = vmatprep.subr.bf16.mxu1 %v2769_v0 }
 0x33a   :  { %2116 = vmatmul.mubr.bf16.vlgmr.msra.gmra.mrb[12].mxu1 %v595_v32 }
 0x33b   :  { %2140 = vmatpush3.bf16.msra.mxu1 %v2882_v1  ;;  %2155 = vmatprep.mubr.msk.bf16.mxu1 %vm2770_vm0, %v2769_v0 }
 0x33c   :  { %2141 = vmatprep.subr.bf16.mxu1 %v2769_v0 }
 0x33f   :  { %2142 = vmatpush3.bf16.msra.mxu1 %v2885_v2 }
 0x340   :  { %2143 = vmatprep.subr.bf16.mxu1 %v2769_v0 }
 0x343   :  { %2144 = vmatpush3.bf16.msra.mxu1 %v2889_v3 }
 0x344   :  { %2145 = vmatprep.subr.bf16.mxu1 %v2769_v0 }
 0x347   :  { %2146 = vmatpush3.bf16.msra.mxu1 %v2895_v5 }
 0x348   :  { %2147 = vmatprep.subr.bf16.mxu1 %v2769_v0 }
 0x34b   :  { %2148 = vmatpush3.bf16.msra.mxu1 %v2903_v7 }
 0x34c   :  { %2149 = vmatprep.subr.bf16.mxu1 %v2769_v0 }
 0x34f   :  { %2150 = vmatpush3.bf16.msra.mxu1 %v2909_v9 }
 0x350   :  { %2151 = vmatprep.subr.bf16.mxu1 %v2769_v0 }
 0x353   :  { %2152 = vmatpush3.bf16.msra.mxu1 %v2919_v11 }
 0x354   :  { %2153 = vmatprep.subr.bf16.mxu1 %v2769_v0 }
 0x357   :  { %2154 = vmatpush3.bf16.msra.mxu1 %v2927_v13 }
 0x358   :  { %2179 = vmatprep.subr.bf16.mxu1 %v2769_v0 }
 0x35a   :  { %2156 = vmatmul.mubr.bf16.vlgmr.msra.gmra.mrb[16].mxu1 %v681_v34 }
 0x35b   :  { %2180 = vmatpush3.bf16.msra.mxu1 %v2948_v19  ;;  %2195 = vmatprep.mubr.msk.bf16.mxu1 %vm2770_vm0, %v2769_v0 }
 0x35c   :  { %2181 = vmatprep.subr.bf16.mxu1 %v2769_v0 }
 0x35f   :  { %2182 = vmatpush3.bf16.msra.mxu1 %v2951_v20 }
 0x360   :  { %2183 = vmatprep.subr.bf16.mxu1 %v2769_v0 }
 0x363   :  { %2184 = vmatpush3.bf16.msra.mxu1 %v2955_v21 }
 0x364   :  { %2185 = vmatprep.subr.bf16.mxu1 %v2769_v0 }
 0x367   :  { %2186 = vmatpush3.bf16.msra.mxu1 %v2959_v22 }
 0x368   :  { %2187 = vmatprep.subr.bf16.mxu1 %v2769_v0 }
 0x36b   :  { %2188 = vmatpush3.bf16.msra.mxu1 %v2963_v23 }
 0x36c   :  { %2189 = vmatprep.subr.bf16.mxu1 %v2769_v0 }
 0x36f   :  { %2190 = vmatpush3.bf16.msra.mxu1 %v2967_v24 }
 0x370   :  { %2191 = vmatprep.subr.bf16.mxu1 %v2769_v0 }
 0x373   :  { %2192 = vmatpush3.bf16.msra.mxu1 %v2971_v25 }
 0x374   :  { %2193 = vmatprep.subr.bf16.mxu1 %v2769_v0 }
 0x377   :  { %2194 = vmatpush3.bf16.msra.mxu1 %v3016_v36 }
 0x378   :  { %2219 = vmatprep.subr.bf16.mxu1 %v2769_v0 }
 0x3ed   :  { %v544_v39 = vpop.f32.mrb[8].mxu1 }
 0x3ee   :  { %v3159_v40 = vadd.f32 %v3152_v35, %v544_v39  ;;  %v2077_v41 = vpop.f32.mrb[9].mxu1 }
 0x3ef   :  { %v547_v43 = vpop.f32.mrb[10].mxu1 }
 0x3f0   :  { %v550_v45 = vmax.f32 %v3159_v40, 0.0  ;;  %v2078_v46 = vpop.f32.mrb[11].mxu1 }
 0x3f2   :  { %v3167_v47 = vmax.f32 %v422_v44, %v550_v45 }
 0x40d   :  { %v630_v48 = vpop.f32.mrb[12].mxu1 }
 0x40e   :  { %v631_v49 = vadd.f32 %v3025_v37, %v630_v48  ;;  %v2117_v50 = vpop.f32.mrb[13].mxu1 }
 0x40f   :  { %v633_v51 = vpop.f32.mrb[14].mxu1 }
 0x410   :  { %v3170_v52 = vmax.f32 %v631_v49, 0.0  ;;  %v2118_v53 = vpop.f32.mrb[15].mxu1 }
 0x412   :  { %v637_v54 = vpack.c.bf16 %v3170_v52, %v3170_v52 }
 0x414   :  { %2136 = vmatmul.mubr.bf16.vlgmr.msra.gmra.mrb[16].mxu0 %v637_v54 }
 0x415   :  { %2160 = vmatpush3.bf16.msra.mxu0 %v2892_v4  ;;  %2175 = vmatprep.mubr.msk.bf16.mxu0 %vm2770_vm0, %v2769_v0 }
 0x416   :  { %2161 = vmatprep.subr.bf16.mxu0 %v2769_v0 }
 0x419   :  { %2162 = vmatpush3.bf16.msra.mxu0 %v2899_v6 }
 0x41a   :  { %2163 = vmatprep.subr.bf16.mxu0 %v2769_v0 }
 0x41d   :  { %2164 = vmatpush3.bf16.msra.mxu0 %v2907_v8 }
 0x41e   :  { %2165 = vmatprep.subr.bf16.mxu0 %v2769_v0 }
 0x421   :  { %2166 = vmatpush3.bf16.msra.mxu0 %v2912_v10 }
 0x422   :  { %2167 = vmatprep.subr.bf16.mxu0 %v2769_v0 }
 0x425   :  { %2168 = vmatpush3.bf16.msra.mxu0 %v2923_v12 }
 0x426   :  { %2169 = vmatprep.subr.bf16.mxu0 %v2769_v0 }
 0x429   :  { %2170 = vmatpush3.bf16.msra.mxu0 %v2931_v15 }
 0x42a   :  { %2171 = vmatprep.subr.bf16.mxu0 %v2769_v0 }
 0x42d   :  { %v716_v55 = vpop.f32.mrb[16].mxu1  ;;  %2172 = vmatpush3.bf16.msra.mxu0 %v2936_v17 }
 0x42e   :  { %v717_v56 = vadd.f32 %v2979_v26, %v716_v55  ;;  %v2157_v57 = vpop.f32.mrb[17].mxu1  ;;  %2173 = vmatprep.subr.bf16.mxu0 %v2769_v0 }
 0x42f   :  { %v719_v58 = vpop.f32.mrb[18].mxu1 }
 0x430   :  { %v722_v59 = vmax.f32 %v717_v56, 0.0  ;;  %v2158_v60 = vpop.f32.mrb[19].mxu1  ;;  %v936_v56 = vld [vmem:[#allocation2 + $0x28] sm:$0xff] }
 0x431   :  { %2174 = vmatpush3.bf16.msra.mxu0 %v2944_v18  ;;  %v937_v57 = vpack.c.bf16 %v936_v56, %v936_v56 }
 0x432   :  { %v723_v61 = vpack.c.bf16 %v722_v59, %v722_v59  ;;  %2199 = vmatprep.subr.bf16.mxu0 %v2769_v0 }
 0x434   :  { %2176 = vmatmul.mubr.bf16.vlgmr.msra.gmra.mrb[20].mxu0 %v723_v61 }
 0x435   :  { %2200 = vmatpush3.bf16.msra.mxu0 %v2882_v1  ;;  %2215 = vmatprep.mubr.msk.bf16.mxu0 %vm2770_vm0, %v2769_v0 }
 0x436   :  { %2201 = vmatprep.subr.bf16.mxu0 %v2769_v0 }
 0x439   :  { %2202 = vmatpush3.bf16.msra.mxu0 %v2885_v2 }
 0x43a   :  { %2203 = vmatprep.subr.bf16.mxu0 %v2769_v0 }
 0x43d   :  { %2204 = vmatpush3.bf16.msra.mxu0 %v2889_v3 }
 0x43e   :  { %2205 = vmatprep.subr.bf16.mxu0 %v2769_v0 }
 0x441   :  { %2206 = vmatpush3.bf16.msra.mxu0 %v2895_v5 }
 0x442   :  { %2207 = vmatprep.subr.bf16.mxu0 %v2769_v0 }
 0x445   :  { %2208 = vmatpush3.bf16.msra.mxu0 %v2903_v7 }
 0x446   :  { %2209 = vmatprep.subr.bf16.mxu0 %v2769_v0 }
 0x449   :  { %2210 = vmatpush3.bf16.msra.mxu0 %v2909_v9 }
 0x44a   :  { %2211 = vmatprep.subr.bf16.mxu0 %v2769_v0 }
 0x44d   :  { %2212 = vmatpush3.bf16.msra.mxu0 %v2919_v11 }
 0x44e   :  { %2213 = vmatprep.subr.bf16.mxu0 %v2769_v0 }
 0x451   :  { %2214 = vmatpush3.bf16.msra.mxu0 %v2927_v13 }
 0x452   :  { %2239 = vmatprep.subr.bf16.mxu0 %v2769_v0 }
 0x454   :  { %2216 = vmatmul.mubr.bf16.vlgmr.msra.gmra.mrb[24].mxu0 %v809_v14 }
 0x455   :  { %2240 = vmatpush3.bf16.msra.mxu0 %v2948_v19  ;;  %2255 = vmatprep.mubr.msk.bf16.mxu0 %vm2770_vm0, %v2769_v0 }
 0x456   :  { %2241 = vmatprep.subr.bf16.mxu0 %v2769_v0 }
 0x459   :  { %2242 = vmatpush3.bf16.msra.mxu0 %v2951_v20 }
 0x45a   :  { %2243 = vmatprep.subr.bf16.mxu0 %v2769_v0 }
 0x45d   :  { %2244 = vmatpush3.bf16.msra.mxu0 %v2955_v21 }
 0x45e   :  { %2245 = vmatprep.subr.bf16.mxu0 %v2769_v0 }
 0x461   :  { %2246 = vmatpush3.bf16.msra.mxu0 %v2959_v22 }
 0x462   :  { %2247 = vmatprep.subr.bf16.mxu0 %v2769_v0 }
 0x465   :  { %2248 = vmatpush3.bf16.msra.mxu0 %v2963_v23 }
 0x466   :  { %2249 = vmatprep.subr.bf16.mxu0 %v2769_v0 }
 0x469   :  { %2250 = vmatpush3.bf16.msra.mxu0 %v2967_v24 }
 0x46a   :  { %2251 = vmatprep.subr.bf16.mxu0 %v2769_v0 }
 0x46d   :  { %2252 = vmatpush3.bf16.msra.mxu0 %v2971_v25 }
 0x46e   :  { %2253 = vmatprep.subr.bf16.mxu0 %v2769_v0 }
 0x471   :  { %2254 = vmatpush3.bf16.msra.mxu0 %v3016_v36 }
 0x472   :  { %2279 = vmatprep.subr.bf16.mxu0 %v2769_v0 }
 0x4e7   :  { %v672_v16 = vpop.f32.mrb[16].mxu0 }
 0x4e8   :  { %v3230_v27 = vadd.f32 %v3152_v35, %v672_v16  ;;  %v2137_v28 = vpop.f32.mrb[17].mxu0 }
 0x4e9   :  { %v675_v29 = vpop.f32.mrb[18].mxu0 }
 0x4ea   :  { %v678_v30 = vmax.f32 %v3230_v27, 0.0  ;;  %v2138_v31 = vpop.f32.mrb[19].mxu0 }
 0x4ec   :  { %v3236_v32 = vmax.f32 %v3167_v47, %v678_v30 }
 0x507   :  { %v758_v33 = vpop.f32.mrb[20].mxu0 }
 0x508   :  { %v759_v34 = vadd.f32 %v3025_v37, %v758_v33  ;;  %v2177_v39 = vpop.f32.mrb[21].mxu0 }
 0x509   :  { %v761_v41 = vpop.f32.mrb[22].mxu0 }
 0x50a   :  { %v3239_v43 = vmax.f32 %v759_v34, 0.0  ;;  %v2178_v46 = vpop.f32.mrb[23].mxu0 }
 0x50c   :  { %v765_v48 = vpack.c.bf16 %v3239_v43, %v3239_v43 }
 0x50e   :  { %2196 = vmatmul.mubr.bf16.vlgmr.msra.gmra.mrb[20].mxu1 %v765_v48 }
 0x50f   :  { %2220 = vmatpush3.bf16.msra.mxu1 %v2892_v4  ;;  %2235 = vmatprep.mubr.msk.bf16.mxu1 %vm2770_vm0, %v2769_v0 }
 0x510   :  { %2221 = vmatprep.subr.bf16.mxu1 %v2769_v0 }
 0x513   :  { %2222 = vmatpush3.bf16.msra.mxu1 %v2899_v6 }
 0x514   :  { %2223 = vmatprep.subr.bf16.mxu1 %v2769_v0 }
 0x517   :  { %2224 = vmatpush3.bf16.msra.mxu1 %v2907_v8 }
 0x518   :  { %2225 = vmatprep.subr.bf16.mxu1 %v2769_v0 }
 0x51b   :  { %2226 = vmatpush3.bf16.msra.mxu1 %v2912_v10 }
 0x51c   :  { %2227 = vmatprep.subr.bf16.mxu1 %v2769_v0 }
 0x51f   :  { %2228 = vmatpush3.bf16.msra.mxu1 %v2923_v12 }
 0x520   :  { %2229 = vmatprep.subr.bf16.mxu1 %v2769_v0 }
 0x523   :  { %2230 = vmatpush3.bf16.msra.mxu1 %v2931_v15 }
 0x524   :  { %2231 = vmatprep.subr.bf16.mxu1 %v2769_v0 }
 0x527   :  { %2232 = vmatpush3.bf16.msra.mxu1 %v2936_v17  ;;  %v844_v47 = vpop.f32.mrb[24].mxu0 }
 0x528   :  { %v845_v49 = vadd.f32 %v2979_v26, %v844_v47  ;;  %v2217_v50 = vpop.f32.mrb[25].mxu0  ;;  %2233 = vmatprep.subr.bf16.mxu1 %v2769_v0 }
 0x529   :  { %v847_v51 = vpop.f32.mrb[26].mxu0 }
 0x52a   :  { %v850_v53 = vmax.f32 %v845_v49, 0.0  ;;  %v2218_v54 = vpop.f32.mrb[27].mxu0 }
 0x52b   :  { %2234 = vmatpush3.bf16.msra.mxu1 %v2944_v18 }
 0x52c   :  { %v851_v55 = vpack.c.bf16 %v850_v53, %v850_v53  ;;  %2259 = vmatprep.subr.bf16.mxu1 %v2769_v0 }
 0x52e   :  { %2236 = vmatmul.mubr.bf16.vlgmr.msra.gmra.mrb[24].mxu1 %v851_v55 }
 0x52f   :  { %2260 = vmatpush3.bf16.msra.mxu1 %v2882_v1  ;;  %2275 = vmatprep.mubr.msk.bf16.mxu1 %vm2770_vm0, %v2769_v0 }
 0x530   :  { %2261 = vmatprep.subr.bf16.mxu1 %v2769_v0 }
 0x533   :  { %2262 = vmatpush3.bf16.msra.mxu1 %v2885_v2 }
 0x534   :  { %2263 = vmatprep.subr.bf16.mxu1 %v2769_v0 }
 0x537   :  { %2264 = vmatpush3.bf16.msra.mxu1 %v2889_v3 }
 0x538   :  { %2265 = vmatprep.subr.bf16.mxu1 %v2769_v0 }
 0x53b   :  { %2266 = vmatpush3.bf16.msra.mxu1 %v2895_v5 }
 0x53c   :  { %2267 = vmatprep.subr.bf16.mxu1 %v2769_v0 }
 0x53f   :  { %2268 = vmatpush3.bf16.msra.mxu1 %v2903_v7 }
 0x540   :  { %2269 = vmatprep.subr.bf16.mxu1 %v2769_v0 }
 0x543   :  { %2270 = vmatpush3.bf16.msra.mxu1 %v2909_v9 }
 0x544   :  { %2271 = vmatprep.subr.bf16.mxu1 %v2769_v0 }
 0x547   :  { %2272 = vmatpush3.bf16.msra.mxu1 %v2919_v11 }
 0x548   :  { %2273 = vmatprep.subr.bf16.mxu1 %v2769_v0 }
 0x54b   :  { %2274 = vmatpush3.bf16.msra.mxu1 %v2927_v13 }
 0x54c   :  { %2299 = vmatprep.subr.bf16.mxu1 %v2769_v0 }
 0x54e   :  { %2276 = vmatmul.mubr.bf16.vlgmr.msra.gmra.mrb[28].mxu1 %v937_v57  ;;  %v3381_v57 = vld [vmem:[#allocation7] sm:$0xff]  }
 0x54f   :  { %2300 = vmatpush3.bf16.msra.mxu1 %v2948_v19  ;;  %2315 = vmatprep.mubr.msk.bf16.mxu1 %vm2770_vm0, %v2769_v0 }
 0x550   :  { %2301 = vmatprep.subr.bf16.mxu1 %v2769_v0 }
 0x553   :  { %2302 = vmatpush3.bf16.msra.mxu1 %v2951_v20 }
 0x554   :  { %2303 = vmatprep.subr.bf16.mxu1 %v2769_v0 }
 0x557   :  { %2304 = vmatpush3.bf16.msra.mxu1 %v2955_v21 }
 0x558   :  { %2305 = vmatprep.subr.bf16.mxu1 %v2769_v0 }
 0x55b   :  { %2306 = vmatpush3.bf16.msra.mxu1 %v2959_v22 }
 0x55c   :  { %2307 = vmatprep.subr.bf16.mxu1 %v2769_v0 }
 0x55f   :  { %2308 = vmatpush3.bf16.msra.mxu1 %v2963_v23 }
 0x560   :  { %2309 = vmatprep.subr.bf16.mxu1 %v2769_v0 }
 0x563   :  { %2310 = vmatpush3.bf16.msra.mxu1 %v2967_v24 }
 0x564   :  { %2311 = vmatprep.subr.bf16.mxu1 %v2769_v0 }
 0x567   :  { %2312 = vmatpush3.bf16.msra.mxu1 %v2971_v25 }
 0x568   :  { %2313 = vmatprep.subr.bf16.mxu1 %v2769_v0 }
 0x56b   :  { %2314 = vmatpush3.bf16.msra.mxu1 %v3016_v36 }
 0x56c   :  { %2339 = vmatprep.subr.bf16.mxu1 %v2769_v0 }
 0x5e1   :  { %v800_v58 = vpop.f32.mrb[20].mxu1 }
 0x5e2   :  { %v3299_v59 = vadd.f32 %v3152_v35, %v800_v58  ;;  %v2197_v60 = vpop.f32.mrb[21].mxu1  ;;  %v3387_v58 = vld [vmem:[#allocation7 + $0x8] sm:$0xff]  }
 0x5e3   :  { %v803_v61 = vpop.f32.mrb[22].mxu1  ;;  %v3391_v60 = vld [vmem:[#allocation7 + $0x10] sm:$0xff]  }
 0x5e4   :  { %v806_v63 = vmax.f32 %v3299_v59, 0.0  ;;  %v2198_v14 = vpop.f32.mrb[23].mxu1  ;;  %v3395_v61 = vld [vmem:[#allocation7 + $0x18] sm:$0xff]  }
 0x5e6   :  { %v3305_v16 = vmax.f32 %v3236_v32, %v806_v63 }
 0x601   :  { %v886_v28 = vpop.f32.mrb[24].mxu1 }
 0x602   :  { %v887_v29 = vadd.f32 %v3025_v37, %v886_v28  ;;  %v2237_v31 = vpop.f32.mrb[25].mxu1 }
 0x603   :  { %v889_v33 = vpop.f32.mrb[26].mxu1 }
 0x604   :  { %v3308_v34 = vmax.f32 %v887_v29, 0.0  ;;  %v2238_v39 = vpop.f32.mrb[27].mxu1 }
 0x605   :  { %v3426_v39 = vld [vmem:[#allocation5 + $0x20] sm:$0xff]  }
 0x606   :  { %v893_v41 = vpack.c.bf16 %v3308_v34, %v3308_v34 }
 0x608   :  { %2256 = vmatmul.mubr.bf16.vlgmr.msra.gmra.mrb[28].mxu0 %v893_v41  ;;  %v3430_v41 = vld [vmem:[#allocation5 + $0x28] sm:$0xff]  }
 0x609   :  { %2280 = vmatpush3.bf16.msra.mxu0 %v2892_v4  ;;  %2295 = vmatprep.mubr.msk.bf16.mxu0 %vm2770_vm0, %v2769_v0 }
 0x60a   :  { %2281 = vmatprep.subr.bf16.mxu0 %v2769_v0 }
 0x60d   :  { %2282 = vmatpush3.bf16.msra.mxu0 %v2899_v6 }
 0x60e   :  { %2283 = vmatprep.subr.bf16.mxu0 %v2769_v0 }
 0x611   :  { %2284 = vmatpush3.bf16.msra.mxu0 %v2907_v8 }
 0x612   :  { %2285 = vmatprep.subr.bf16.mxu0 %v2769_v0 }
 0x615   :  { %2286 = vmatpush3.bf16.msra.mxu0 %v2912_v10 }
 0x616   :  { %2287 = vmatprep.subr.bf16.mxu0 %v2769_v0 }
 0x619   :  { %2288 = vmatpush3.bf16.msra.mxu0 %v2923_v12 }
 0x61a   :  { %2289 = vmatprep.subr.bf16.mxu0 %v2769_v0 }
 0x61d   :  { %2290 = vmatpush3.bf16.msra.mxu0 %v2931_v15 }
 0x61e   :  { %2291 = vmatprep.subr.bf16.mxu0 %v2769_v0 }
 0x621   :  { %v972_v4 = vpop.f32.mrb[28].mxu1  ;;  %2292 = vmatpush3.bf16.msra.mxu0 %v2936_v17 }
 0x622   :  { %v973_v6 = vadd.f32 %v2979_v26, %v972_v4  ;;  %v2277_v8 = vpop.f32.mrb[29].mxu1  ;;  %2293 = vmatprep.subr.bf16.mxu0 %v2769_v0  ;;  %v3434_v4 = vld [vmem:[#allocation5 + $0x30] sm:$0xff]  }
 0x623   :  { %v975_v32 = vpop.f32.mrb[30].mxu1 }
 0x624   :  { %v978_v10 = vmax.f32 %v973_v6, 0.0  ;;  %v2278_v46 = vpop.f32.mrb[31].mxu1  ;;  %v1192_v6 = vld [vmem:[#allocation2 + $0x38] sm:$0xff]  ;;  %v3438_v32 = vld [vmem:[#allocation5 + $0x38] sm:$0xff]  }
 0x625   :  { %2294 = vmatpush3.bf16.msra.mxu0 %v2944_v18  ;;  %v1193_v8 = vpack.c.bf16 %v1192_v6, %v1192_v6  ;;  %v3542_v6 = vld [vmem:[#allocation8 + $0x20] sm:$0xff]  }
 0x626   :  { %v979_v48 = vpack.c.bf16 %v978_v10, %v978_v10  ;;  %2319 = vmatprep.subr.bf16.mxu0 %v2769_v0 }
 0x628   :  { %2296 = vmatmul.mubr.bf16.vlgmr.msra.gmra.mrb[32].mxu0 %v979_v48 }
 0x629   :  { %2320 = vmatpush3.bf16.msra.mxu0 %v2882_v1  ;;  %2335 = vmatprep.mubr.msk.bf16.mxu0 %vm2770_vm0, %v2769_v0  ;;  %v1064_v1 = vld [vmem:[#allocation2 + $0x30] sm:$0xff] }
 0x62a   :  { %2321 = vmatprep.subr.bf16.mxu0 %v2769_v0 }
 0x62d   :  { %2322 = vmatpush3.bf16.msra.mxu0 %v2885_v2  ;;  %v1065_v2 = vpack.c.bf16 %v1064_v1, %v1064_v1 }
 0x62e   :  { %2323 = vmatprep.subr.bf16.mxu0 %v2769_v0 }
 0x631   :  { %2324 = vmatpush3.bf16.msra.mxu0 %v2889_v3 }
 0x632   :  { %2325 = vmatprep.subr.bf16.mxu0 %v2769_v0 }
 0x635   :  { %2326 = vmatpush3.bf16.msra.mxu0 %v2895_v5 }
 0x636   :  { %2327 = vmatprep.subr.bf16.mxu0 %v2769_v0 }
 0x639   :  { %2328 = vmatpush3.bf16.msra.mxu0 %v2903_v7 }
 0x63a   :  { %2329 = vmatprep.subr.bf16.mxu0 %v2769_v0 }
 0x63d   :  { %2330 = vmatpush3.bf16.msra.mxu0 %v2909_v9 }
 0x63e   :  { %2331 = vmatprep.subr.bf16.mxu0 %v2769_v0 }
 0x641   :  { %2332 = vmatpush3.bf16.msra.mxu0 %v2919_v11 }
 0x642   :  { %2333 = vmatprep.subr.bf16.mxu0 %v2769_v0 }
 0x645   :  { %2334 = vmatpush3.bf16.msra.mxu0 %v2927_v13 }
 0x646   :  { %2359 = vmatprep.subr.bf16.mxu0 %v2769_v0 }
 0x648   :  { %2336 = vmatmul.mubr.bf16.vlgmr.msra.gmra.mrb[36].mxu0 %v1065_v2 }
 0x649   :  { %2360 = vmatpush3.bf16.msra.mxu0 %v2948_v19  ;;  %2375 = vmatprep.mubr.msk.bf16.mxu0 %vm2770_vm0, %v2769_v0 }
 0x64a   :  { %2361 = vmatprep.subr.bf16.mxu0 %v2769_v0 }
 0x64d   :  { %2362 = vmatpush3.bf16.msra.mxu0 %v2951_v20 }
 0x64e   :  { %2363 = vmatprep.subr.bf16.mxu0 %v2769_v0 }
 0x651   :  { %2364 = vmatpush3.bf16.msra.mxu0 %v2955_v21 }
 0x652   :  { %2365 = vmatprep.subr.bf16.mxu0 %v2769_v0 }
 0x655   :  { %2366 = vmatpush3.bf16.msra.mxu0 %v2959_v22 }
 0x656   :  { %2367 = vmatprep.subr.bf16.mxu0 %v2769_v0 }
 0x659   :  { %2368 = vmatpush3.bf16.msra.mxu0 %v2963_v23 }
 0x65a   :  { %2369 = vmatprep.subr.bf16.mxu0 %v2769_v0 }
 0x65d   :  { %2370 = vmatpush3.bf16.msra.mxu0 %v2967_v24 }
 0x65e   :  { %2371 = vmatprep.subr.bf16.mxu0 %v2769_v0 }
 0x661   :  { %2372 = vmatpush3.bf16.msra.mxu0 %v2971_v25 }
 0x662   :  { %2373 = vmatprep.subr.bf16.mxu0 %v2769_v0 }
 0x665   :  { %2374 = vmatpush3.bf16.msra.mxu0 %v3016_v36 }
 0x666   :  { %2399 = vmatprep.subr.bf16.mxu0 %v2769_v0 }
 0x6db   :  { %v928_v3 = vpop.f32.mrb[28].mxu0 }
 0x6dc   :  { %v3368_v5 = vadd.f32 %v3152_v35, %v928_v3  ;;  %v2257_v7 = vpop.f32.mrb[29].mxu0 }
 0x6dd   :  { %v931_v9 = vpop.f32.mrb[30].mxu0  ;;  %v3488_v7 = vld [vmem:[#allocation7 + $0x28] sm:$0xff]  }
 0x6de   :  { %v934_v11 = vmax.f32 %v3368_v5, 0.0  ;;  %v2258_v13 = vpop.f32.mrb[31].mxu0 }
 0x6df   :  { %v3492_v13 = vld [vmem:[#allocation7 + $0x30] sm:$0xff]  }
 0x6e0   :  { %v3374_v47 = vmax.f32 %v3305_v16, %v934_v11 }
 0x6fb   :  { %v1014_v49 = vpop.f32.mrb[32].mxu0 }
 0x6fc   :  { %v1015_v50 = vadd.f32 %v3025_v37, %v1014_v49  ;;  %v2297_v51 = vpop.f32.mrb[33].mxu0 }
 0x6fd   :  { %v1017_v53 = vpop.f32.mrb[34].mxu0 }
 0x6fe   :  { %v3377_v54 = vmax.f32 %v1015_v50, 0.0  ;;  %v2298_v55 = vpop.f32.mrb[35].mxu0 }
 0x700   :  { %v1021_v56 = vpack.c.bf16 %v3377_v54, %v3377_v54 }
 0x702   :  { %2316 = vmatmul.mubr.bf16.vlgmr.msra.gmra.mrb[32].mxu1 %v1021_v56  ;;  %v3502_v56 = vld [vmem:[#allocation7 + $0x38] sm:$0xff]  }
 0x703   :  { %2340 = vmatpush3.bf16.msra.mxu1 %v3381_v57  ;;  %2355 = vmatprep.mubr.msk.bf16.mxu1 %vm2770_vm0, %v2769_v0 }
 0x704   :  { %2341 = vmatprep.subr.bf16.mxu1 %v2769_v0 }
 0x707   :  { %2342 = vmatpush3.bf16.msra.mxu1 %v3387_v58 }
 0x708   :  { %2343 = vmatprep.subr.bf16.mxu1 %v2769_v0 }
 0x70b   :  { %2344 = vmatpush3.bf16.msra.mxu1 %v3391_v60 }
 0x70c   :  { %2345 = vmatprep.subr.bf16.mxu1 %v2769_v0 }
 0x70f   :  { %2346 = vmatpush3.bf16.msra.mxu1 %v3395_v61 }
 0x710   :  { %2347 = vmatprep.subr.bf16.mxu1 %v2769_v0 }
 0x713   :  { %2348 = vmatpush3.bf16.msra.mxu1 %v2923_v12 }
 0x714   :  { %2349 = vmatprep.subr.bf16.mxu1 %v2769_v0 }
 0x717   :  { %2350 = vmatpush3.bf16.msra.mxu1 %v2931_v15  ;;  %v3408_v15 = vld [vmem:[#allocation5] sm:$0xff]  }
 0x718   :  { %2351 = vmatprep.subr.bf16.mxu1 %v2769_v0 }
 0x71b   :  { %2352 = vmatpush3.bf16.msra.mxu1 %v2936_v17  ;;  %v1100_v14 = vpop.f32.mrb[36].mxu0  ;;  %v3414_v17 = vld [vmem:[#allocation5 + $0x8] sm:$0xff]  }
 0x71c   :  { %v1101_v16 = vadd.f32 %v2979_v26, %v1100_v14  ;;  %v2337_v28 = vpop.f32.mrb[37].mxu0  ;;  %2353 = vmatprep.subr.bf16.mxu1 %v2769_v0  ;;  %v3422_v26 = vld [vmem:[#allocation5 + $0x18] sm:$0xff]  }
 0x71d   :  { %v1103_v29 = vpop.f32.mrb[38].mxu0 }
 0x71e   :  { %v1106_v31 = vmax.f32 %v1101_v16, 0.0  ;;  %v2338_v33 = vpop.f32.mrb[39].mxu0  ;;  %v1320_v16 = vld [vmem:[#allocation2 + $0x40] sm:$0xff]  ;;  %v3524_v29 = vld [vmem:[#allocation8] sm:$0xff]  }
 0x71f   :  { %2354 = vmatpush3.bf16.msra.mxu1 %v2944_v18  ;;  %v3418_v18 = vld [vmem:[#allocation5 + $0x10] sm:$0xff]   ;;  %v1321_v28 = vpack.c.bf16 %v1320_v16, %v1320_v16 }
 0x720   :  { %v1107_v12 = vpack.c.bf16 %v1106_v31, %v1106_v31  ;;  %2379 = vmatprep.subr.bf16.mxu1 %v2769_v0  ;;  %v3530_v31 = vld [vmem:[#allocation8 + $0x8] sm:$0xff]   ;;  %v3534_v33 = vld [vmem:[#allocation8 + $0x10] sm:$0xff]  }
 0x722   :  { %2356 = vmatmul.mubr.bf16.vlgmr.msra.gmra.mrb[36].mxu1 %v1107_v12  ;;  %v3538_v12 = vld [vmem:[#allocation8 + $0x18] sm:$0xff]  }
 0x723   :  { %2380 = vmatpush3.bf16.msra.mxu1 %v3408_v15  ;;  %2395 = vmatprep.mubr.msk.bf16.mxu1 %vm2770_vm0, %v2769_v0 }
 0x724   :  { %2381 = vmatprep.subr.bf16.mxu1 %v2769_v0 }
 0x727   :  { %2382 = vmatpush3.bf16.msra.mxu1 %v3414_v17 }
 0x728   :  { %2383 = vmatprep.subr.bf16.mxu1 %v2769_v0 }
 0x72b   :  { %2384 = vmatpush3.bf16.msra.mxu1 %v3418_v18 }
 0x72c   :  { %2385 = vmatprep.subr.bf16.mxu1 %v2769_v0 }
 0x72f   :  { %2386 = vmatpush3.bf16.msra.mxu1 %v3422_v26 }
 0x730   :  { %2387 = vmatprep.subr.bf16.mxu1 %v2769_v0 }
 0x733   :  { %2388 = vmatpush3.bf16.msra.mxu1 %v3426_v39 }
 0x734   :  { %2389 = vmatprep.subr.bf16.mxu1 %v2769_v0 }
 0x737   :  { %2390 = vmatpush3.bf16.msra.mxu1 %v3430_v41 }
 0x738   :  { %2391 = vmatprep.subr.bf16.mxu1 %v2769_v0 }
 0x73b   :  { %2392 = vmatpush3.bf16.msra.mxu1 %v3434_v4 }
 0x73c   :  { %2393 = vmatprep.subr.bf16.mxu1 %v2769_v0 }
 0x73f   :  { %2394 = vmatpush3.bf16.msra.mxu1 %v3438_v32 }
 0x740   :  { %2419 = vmatprep.subr.bf16.mxu1 %v2769_v0 }
 0x742   :  { %2396 = vmatmul.mubr.bf16.vlgmr.msra.gmra.mrb[40].mxu1 %v1193_v8  ;;  %v3546_v8 = vld [vmem:[#allocation8 + $0x28] sm:$0xff]  }
 0x743   :  { %2420 = vmatpush3.bf16.msra.mxu1 %v2948_v19  ;;  %2435 = vmatprep.mubr.msk.bf16.mxu1 %vm2770_vm0, %v2769_v0 }
 0x744   :  { %2421 = vmatprep.subr.bf16.mxu1 %v2769_v0 }
 0x747   :  { %2422 = vmatpush3.bf16.msra.mxu1 %v2951_v20 }
 0x748   :  { %2423 = vmatprep.subr.bf16.mxu1 %v2769_v0 }
 0x74b   :  { %2424 = vmatpush3.bf16.msra.mxu1 %v2955_v21 }
 0x74c   :  { %2425 = vmatprep.subr.bf16.mxu1 %v2769_v0 }
 0x74f   :  { %2426 = vmatpush3.bf16.msra.mxu1 %v2959_v22 }
 0x750   :  { %2427 = vmatprep.subr.bf16.mxu1 %v2769_v0 }
 0x753   :  { %2428 = vmatpush3.bf16.msra.mxu1 %v2963_v23 }
 0x754   :  { %2429 = vmatprep.subr.bf16.mxu1 %v2769_v0 }
 0x757   :  { %2430 = vmatpush3.bf16.msra.mxu1 %v2967_v24 }
 0x758   :  { %2431 = vmatprep.subr.bf16.mxu1 %v2769_v0 }
 0x75b   :  { %2432 = vmatpush3.bf16.msra.mxu1 %v2971_v25 }
 0x75c   :  { %2433 = vmatprep.subr.bf16.mxu1 %v2769_v0 }
 0x75f   :  { %2434 = vmatpush3.bf16.msra.mxu1 %v3016_v36 }
 0x760   :  { %2459 = vmatprep.subr.bf16.mxu1 %v2769_v0 }
 0x7d5   :  { %v1056_v19 = vpop.f32.mrb[32].mxu1 }
 0x7d6   :  { %v3461_v20 = vadd.f32 %v3152_v35, %v1056_v19  ;;  %v2317_v21 = vpop.f32.mrb[33].mxu1  ;;  %v3550_v19 = vld [vmem:[#allocation8 + $0x30] sm:$0xff]  }
 0x7d7   :  { %v1059_v22 = vpop.f32.mrb[34].mxu1  ;;  %v3554_v21 = vld [vmem:[#allocation8 + $0x38] sm:$0xff]  }
 0x7d8   :  { %v1062_v23 = vmax.f32 %v3461_v20, 0.0  ;;  %v2318_v10 = vpop.f32.mrb[35].mxu1 }
 0x7da   :  { %v3467_v24 = vmax.f32 %v3374_v47, %v1062_v23  ;;  %v3498_v47 = vld [vmem:[%s3710_s2] ss:$0 sm:$0xff] }
 0x7f5   :  { %v1142_v25 = vpop.f32.mrb[36].mxu1 }
 0x7f6   :  { %v1143_v46 = vadd.f32 %v3025_v37, %v1142_v25  ;;  %v2357_v36 = vpop.f32.mrb[37].mxu1  ;;  %v3484_v37 = vld [vmem:[#allocation7 + $0x20] sm:$0xff]  }
 0x7f7   :  { %v1145_v48 = vpop.f32.mrb[38].mxu1 }
 0x7f8   :  { %v3470_v1 = vmax.f32 %v1143_v46, 0.0  ;;  %v2358_v2 = vpop.f32.mrb[39].mxu1 }
 0x7fa   :  { %v1149_v3 = vpack.c.bf16 %v3470_v1, %v3470_v1 }
 0x7fc   :  { %2376 = vmatmul.mubr.bf16.vlgmr.msra.gmra.mrb[40].mxu0 %v1149_v3 }
 0x7fd   :  { %2400 = vmatpush3.bf16.msra.mxu0 %v3381_v57  ;;  %2415 = vmatprep.mubr.msk.bf16.mxu0 %vm2770_vm0, %v2769_v0 }
 0x7fe   :  { %2401 = vmatprep.subr.bf16.mxu0 %v2769_v0 }
 0x801   :  { %2402 = vmatpush3.bf16.msra.mxu0 %v3387_v58 }
 0x802   :  { %2403 = vmatprep.subr.bf16.mxu0 %v2769_v0 }
 0x805   :  { %2404 = vmatpush3.bf16.msra.mxu0 %v3391_v60 }
 0x806   :  { %2405 = vmatprep.subr.bf16.mxu0 %v2769_v0 }
 0x809   :  { %2406 = vmatpush3.bf16.msra.mxu0 %v3395_v61 }
 0x80a   :  { %2407 = vmatprep.subr.bf16.mxu0 %v2769_v0 }
 0x80d   :  { %2408 = vmatpush3.bf16.msra.mxu0 %v3484_v37 }
 0x80e   :  { %2409 = vmatprep.subr.bf16.mxu0 %v2769_v0 }
 0x811   :  { %2410 = vmatpush3.bf16.msra.mxu0 %v3488_v7 }
 0x812   :  { %2411 = vmatprep.subr.bf16.mxu0 %v2769_v0 }
 0x815   :  { %v1228_v9 = vpop.f32.mrb[40].mxu1  ;;  %2412 = vmatpush3.bf16.msra.mxu0 %v3492_v13 }
 0x816   :  { %v1229_v49 = vadd.f32 %v3498_v47, %v1228_v9  ;;  %v2397_v50 = vpop.f32.mrb[41].mxu1  ;;  %2413 = vmatprep.subr.bf16.mxu0 %v2769_v0  ;;  %v3570_v9 = vld [vmem:[%s3712_s4] ss:$0 sm:$0xff] }
 0x817   :  { %v1231_v51 = vpop.f32.mrb[42].mxu1 }
 0x818   :  { %v1234_v53 = vmax.f32 %v1229_v49, 0.0  ;;  %v2398_v55 = vpop.f32.mrb[43].mxu1 }
 0x819   :  { %2414 = vmatpush3.bf16.msra.mxu0 %v3502_v56 }
 0x81a   :  { %v1235_v14 = vpack.c.bf16 %v1234_v53, %v1234_v53  ;;  %2439 = vmatprep.subr.bf16.mxu0 %v2769_v0 }
 0x81c   :  { %2416 = vmatmul.mubr.bf16.vlgmr.msra.gmra.mrb[44].mxu0 %v1235_v14 }
 0x81d   :  { %2440 = vmatpush3.bf16.msra.mxu0 %v3408_v15  ;;  %2455 = vmatprep.mubr.msk.bf16.mxu0 %vm2770_vm0, %v2769_v0 }
 0x81e   :  { %2441 = vmatprep.subr.bf16.mxu0 %v2769_v0 }
 0x821   :  { %2442 = vmatpush3.bf16.msra.mxu0 %v3414_v17 }
 0x822   :  { %2443 = vmatprep.subr.bf16.mxu0 %v2769_v0 }
 0x825   :  { %2444 = vmatpush3.bf16.msra.mxu0 %v3418_v18 }
 0x826   :  { %2445 = vmatprep.subr.bf16.mxu0 %v2769_v0 }
 0x829   :  { %2446 = vmatpush3.bf16.msra.mxu0 %v3422_v26 }
 0x82a   :  { %2447 = vmatprep.subr.bf16.mxu0 %v2769_v0 }
 0x82d   :  { %2448 = vmatpush3.bf16.msra.mxu0 %v3426_v39 }
 0x82e   :  { %2449 = vmatprep.subr.bf16.mxu0 %v2769_v0 }
 0x831   :  { %2450 = vmatpush3.bf16.msra.mxu0 %v3430_v41 }
 0x832   :  { %2451 = vmatprep.subr.bf16.mxu0 %v2769_v0 }
 0x835   :  { %2452 = vmatpush3.bf16.msra.mxu0 %v3434_v4 }
 0x836   :  { %2453 = vmatprep.subr.bf16.mxu0 %v2769_v0 }
 0x839   :  { %2454 = vmatpush3.bf16.msra.mxu0 %v3438_v32 }
 0x83a   :  { %2479 = vmatprep.subr.bf16.mxu0 %v2769_v0 }
 0x83c   :  { %2456 = vmatmul.mubr.bf16.vlgmr.msra.gmra.mrb[48].mxu0 %v1321_v28 }
 0x83d   :  { %2480 = vmatpush3.bf16.msra.mxu0 %v3524_v29  ;;  %2495 = vmatprep.mubr.msk.bf16.mxu0 %vm2770_vm0, %v2769_v0 }
 0x83e   :  { %2481 = vmatprep.subr.bf16.mxu0 %v2769_v0 }
 0x841   :  { %2482 = vmatpush3.bf16.msra.mxu0 %v3530_v31 }
 0x842   :  { %2483 = vmatprep.subr.bf16.mxu0 %v2769_v0 }
 0x845   :  { %2484 = vmatpush3.bf16.msra.mxu0 %v3534_v33 }
 0x846   :  { %2485 = vmatprep.subr.bf16.mxu0 %v2769_v0 }
 0x849   :  { %2486 = vmatpush3.bf16.msra.mxu0 %v3538_v12 }
 0x84a   :  { %2487 = vmatprep.subr.bf16.mxu0 %v2769_v0 }
 0x84d   :  { %2488 = vmatpush3.bf16.msra.mxu0 %v3542_v6 }
 0x84e   :  { %2489 = vmatprep.subr.bf16.mxu0 %v2769_v0 }
 0x851   :  { %2490 = vmatpush3.bf16.msra.mxu0 %v3546_v8 }
 0x852   :  { %2491 = vmatprep.subr.bf16.mxu0 %v2769_v0 }
 0x855   :  { %2492 = vmatpush3.bf16.msra.mxu0 %v3550_v19 }
 0x856   :  { %2493 = vmatprep.subr.bf16.mxu0 %v2769_v0 }
 0x859   :  { %2494 = vmatpush3.bf16.msra.mxu0 %v3554_v21 }
 0x85a   :  { %2519 = vmatprep.subr.bf16.mxu0 %v2769_v0 }
 0x8cf   :  { %v1184_v22 = vpop.f32.mrb[40].mxu0 }
 0x8d0   :  { %v3559_v10 = vadd.f32 %v3152_v35, %v1184_v22  ;;  %v2377_v25 = vpop.f32.mrb[41].mxu0 }
 0x8d1   :  { %v1187_v46 = vpop.f32.mrb[42].mxu0 }
 0x8d2   :  { %v1190_v36 = vmax.f32 %v3559_v10, 0.0  ;;  %v2378_v48 = vpop.f32.mrb[43].mxu0 }
 0x8d4   :  { %v3565_v2 = vmax.f32 %v3467_v24, %v1190_v36 }
 0x8ef   :  { %v1270_v3 = vpop.f32.mrb[44].mxu0 }
 0x8f0   :  { %v1271_v49 = vadd.f32 %v3570_v9, %v1270_v3  ;;  %v2417_v50 = vpop.f32.mrb[45].mxu0 }
 0x8f1   :  { %v1273_v51 = vpop.f32.mrb[46].mxu0 }
 0x8f2   :  { %v3573_v53 = vmax.f32 %v1271_v49, 0.0  ;;  %v2418_v55 = vpop.f32.mrb[47].mxu0 }
 0x8f4   :  { %v1277_v14 = vpack.c.bf16 %v3573_v53, %v3573_v53 }
 0x8f6   :  { %2436 = vmatmul.mubr.bf16.vlgmr.msra.gmra.mrb[44].mxu1 %v1277_v14 }
 0x8f7   :  { %2460 = vmatpush3.bf16.msra.mxu1 %v3381_v57  ;;  %2475 = vmatprep.mubr.msk.bf16.mxu1 %vm2770_vm0, %v2769_v0 }
 0x8f8   :  { %2461 = vmatprep.subr.bf16.mxu1 %v2769_v0 }
 0x8fb   :  { %2462 = vmatpush3.bf16.msra.mxu1 %v3387_v58 }
 0x8fc   :  { %2463 = vmatprep.subr.bf16.mxu1 %v2769_v0 }
 0x8ff   :  { %2464 = vmatpush3.bf16.msra.mxu1 %v3391_v60 }
 0x900   :  { %2465 = vmatprep.subr.bf16.mxu1 %v2769_v0 }
 0x903   :  { %2466 = vmatpush3.bf16.msra.mxu1 %v3395_v61 }
 0x904   :  { %2467 = vmatprep.subr.bf16.mxu1 %v2769_v0 }
 0x907   :  { %2468 = vmatpush3.bf16.msra.mxu1 %v3484_v37 }
 0x908   :  { %2469 = vmatprep.subr.bf16.mxu1 %v2769_v0 }
 0x90b   :  { %2470 = vmatpush3.bf16.msra.mxu1 %v3488_v7 }
 0x90c   :  { %2471 = vmatprep.subr.bf16.mxu1 %v2769_v0 }
 0x90f   :  { %2472 = vmatpush3.bf16.msra.mxu1 %v3492_v13  ;;  %v1356_v24 = vpop.f32.mrb[48].mxu0 }
 0x910   :  { %v1357_v16 = vadd.f32 %v3498_v47, %v1356_v24  ;;  %v2457_v28 = vpop.f32.mrb[49].mxu0  ;;  %2473 = vmatprep.subr.bf16.mxu1 %v2769_v0 }
 0x911   :  { %v1359_v22 = vpop.f32.mrb[50].mxu0 }
 0x912   :  { %v1362_v25 = vmax.f32 %v1357_v16, 0.0  ;;  %v2458_v46 = vpop.f32.mrb[51].mxu0 }
 0x913   :  { %2474 = vmatpush3.bf16.msra.mxu1 %v3502_v56 }
 0x914   :  { %v1363_v48 = vpack.c.bf16 %v1362_v25, %v1362_v25  ;;  %2499 = vmatprep.subr.bf16.mxu1 %v2769_v0 }
 0x916   :  { %2476 = vmatmul.mubr.bf16.vlgmr.msra.gmra.mrb[48].mxu1 %v1363_v48 }
 0x917   :  { %2500 = vmatpush3.bf16.msra.mxu1 %v3408_v15  ;;  %2515 = vmatprep.mubr.msk.bf16.mxu1 %vm2770_vm0, %v2769_v0  ;;  %v1448_v15 = vld [vmem:[#allocation2 + $0x48] sm:$0xff] }
 0x918   :  { %2501 = vmatprep.subr.bf16.mxu1 %v2769_v0 }
 0x91b   :  { %2502 = vmatpush3.bf16.msra.mxu1 %v3414_v17  ;;  %v1449_v17 = vpack.c.bf16 %v1448_v15, %v1448_v15 }
 0x91c   :  { %2503 = vmatprep.subr.bf16.mxu1 %v2769_v0 }
 0x91f   :  { %2504 = vmatpush3.bf16.msra.mxu1 %v3418_v18 }
 0x920   :  { %2505 = vmatprep.subr.bf16.mxu1 %v2769_v0 }
 0x923   :  { %2506 = vmatpush3.bf16.msra.mxu1 %v3422_v26 }
 0x924   :  { %2507 = vmatprep.subr.bf16.mxu1 %v2769_v0 }
 0x927   :  { %2508 = vmatpush3.bf16.msra.mxu1 %v3426_v39 }
 0x928   :  { %2509 = vmatprep.subr.bf16.mxu1 %v2769_v0 }
 0x92b   :  { %2510 = vmatpush3.bf16.msra.mxu1 %v3430_v41 }
 0x92c   :  { %2511 = vmatprep.subr.bf16.mxu1 %v2769_v0 }
 0x92f   :  { %2512 = vmatpush3.bf16.msra.mxu1 %v3434_v4 }
 0x930   :  { %2513 = vmatprep.subr.bf16.mxu1 %v2769_v0 }
 0x933   :  { %2514 = vmatpush3.bf16.msra.mxu1 %v3438_v32 }
 0x934   :  { %2539 = vmatprep.subr.bf16.mxu1 %v2769_v0 }
 0x936   :  { %2516 = vmatmul.mubr.bf16.vlgmr.msra.gmra.mrb[52].mxu1 %v1449_v17 }
 0x937   :  { %2540 = vmatpush3.bf16.msra.mxu1 %v3524_v29  ;;  %2555 = vmatprep.mubr.msk.bf16.mxu1 %vm2770_vm0, %v2769_v0 }
 0x938   :  { %2541 = vmatprep.subr.bf16.mxu1 %v2769_v0 }
 0x93b   :  { %2542 = vmatpush3.bf16.msra.mxu1 %v3530_v31 }
 0x93c   :  { %2543 = vmatprep.subr.bf16.mxu1 %v2769_v0 }
 0x93f   :  { %2544 = vmatpush3.bf16.msra.mxu1 %v3534_v33 }
 0x940   :  { %2545 = vmatprep.subr.bf16.mxu1 %v2769_v0 }
 0x943   :  { %2546 = vmatpush3.bf16.msra.mxu1 %v3538_v12 }
 0x944   :  { %2547 = vmatprep.subr.bf16.mxu1 %v2769_v0 }
 0x947   :  { %2548 = vmatpush3.bf16.msra.mxu1 %v3542_v6 }
 0x948   :  { %2549 = vmatprep.subr.bf16.mxu1 %v2769_v0 }
 0x94b   :  { %2550 = vmatpush3.bf16.msra.mxu1 %v3546_v8 }
 0x94c   :  { %2551 = vmatprep.subr.bf16.mxu1 %v2769_v0 }
 0x94f   :  { %2552 = vmatpush3.bf16.msra.mxu1 %v3550_v19 }
 0x950   :  { %2553 = vmatprep.subr.bf16.mxu1 %v2769_v0 }
 0x953   :  { %2554 = vmatpush3.bf16.msra.mxu1 %v3554_v21 }
 0x9c9   :  { %v1312_v18 = vpop.f32.mrb[44].mxu1 }
 0x9ca   :  { %v3632_v26 = vadd.f32 %v3152_v35, %v1312_v18  ;;  %v2437_v39 = vpop.f32.mrb[45].mxu1 }
 0x9cb   :  { %v1315_v41 = vpop.f32.mrb[46].mxu1 }
 0x9cc   :  { %v1318_v4 = vmax.f32 %v3632_v26, 0.0  ;;  %v2438_v32 = vpop.f32.mrb[47].mxu1 }
 0x9ce   :  { %v1581_v29 = vmax.f32 %v3565_v2, %v1318_v4 }
 0x9e9   :  { %v1398_v31 = vpop.f32.mrb[48].mxu1 }
 0x9ea   :  { %v1399_v33 = vadd.f32 %v3570_v9, %v1398_v31  ;;  %v2477_v12 = vpop.f32.mrb[49].mxu1 }
 0x9eb   :  { %v1401_v6 = vpop.f32.mrb[50].mxu1 }
 0x9ec   :  { %v3639_v8 = vmax.f32 %v1399_v33, 0.0  ;;  %v2478_v19 = vpop.f32.mrb[51].mxu1 }
 0x9ee   :  { %v1405_v21 = vpack.c.bf16 %v3639_v8, %v3639_v8 }
 0x9f0   :  { %2496 = vmatmul.mubr.bf16.vlgmr.msra.gmra.mrb[52].mxu0 %v1405_v21 }
 0x9f1   :  { %2520 = vmatpush3.bf16.msra.mxu0 %v3381_v57  ;;  %2535 = vmatprep.mubr.msk.bf16.mxu0 %vm2770_vm0, %v2769_v0 }
 0x9f2   :  { %2521 = vmatprep.subr.bf16.mxu0 %v2769_v0 }
 0x9f5   :  { %2522 = vmatpush3.bf16.msra.mxu0 %v3387_v58 }
 0x9f6   :  { %2523 = vmatprep.subr.bf16.mxu0 %v2769_v0 }
 0x9f9   :  { %2524 = vmatpush3.bf16.msra.mxu0 %v3391_v60 }
 0x9fa   :  { %2525 = vmatprep.subr.bf16.mxu0 %v2769_v0 }
 0x9fd   :  { %2526 = vmatpush3.bf16.msra.mxu0 %v3395_v61 }
 0x9fe   :  { %2527 = vmatprep.subr.bf16.mxu0 %v2769_v0 }
 0xa01   :  { %2528 = vmatpush3.bf16.msra.mxu0 %v3484_v37 }
 0xa02   :  { %2529 = vmatprep.subr.bf16.mxu0 %v2769_v0 }
 0xa05   :  { %2530 = vmatpush3.bf16.msra.mxu0 %v3488_v7 }
 0xa06   :  { %2531 = vmatprep.subr.bf16.mxu0 %v2769_v0 }
 0xa09   :  { %v1484_v57 = vpop.f32.mrb[52].mxu1  ;;  %2532 = vmatpush3.bf16.msra.mxu0 %v3492_v13 }
 0xa0a   :  { %v1485_v58 = vadd.f32 %v3498_v47, %v1484_v57  ;;  %v2517_v60 = vpop.f32.mrb[53].mxu1  ;;  %2533 = vmatprep.subr.bf16.mxu0 %v2769_v0 }
 0xa0b   :  { %v1487_v2 = vpop.f32.mrb[54].mxu1 }
 0xa0c   :  { %v1490_v61 = vmax.f32 %v1485_v58, 0.0  ;;  %v2518_v3 = vpop.f32.mrb[55].mxu1 }
 0xa0d   :  { %2534 = vmatpush3.bf16.msra.mxu0 %v3502_v56 }
 0xa0e   :  { %v1491_v37 = vpack.c.bf16 %v1490_v61, %v1490_v61 }
 0xa10   :  { %2536 = vmatmul.mubr.bf16.vlgmr.msra.gmra.mrb[56].mxu0 %v1491_v37 }
 0xac3   :  { %v1440_v49 = vpop.f32.mrb[52].mxu0 }
 0xac4   :  { %v1441_v7 = vadd.f32 %v3152_v35, %v1440_v49  ;;  %v2497_v50 = vpop.f32.mrb[53].mxu0  ;;  %v2642_v35 = vld [vmem:[%s3714_s6] ss:$0 sm:$0xff]  ;;  %s2771_s6 = smov [#allocation10]  }
 0xac5   :  { %v1443_v51 = vpop.f32.mrb[54].mxu0  ;;  %s1651_s14 = sshll.u32 %s2771_s6, 4  ;;  %s1652_s14 = int_to_ptr.vmem [resolvable:$true] %s1651_s14 }
 0xac6   :  { %v1446_v55 = vmax.f32 %v1441_v7, 0.0  ;;  %v2498_v14 = vpop.f32.mrb[55].mxu0  ;;  %s2731_s15 = scalar_lea.vmem %s1652_s14, 128  ;;  %p2736_p5 = scmp.lt.s32.totalorder %s1652_s14, %s1652_s14 }
 0xac7   :  { %p2732_p4 = scmp.ne.s32.totalorder %s1652_s14, %s2731_s15  ;;  %p2737_p6 = scmp.lt.s32.totalorder %s2731_s15, %s2731_s15 }
 0xac8   :  { %v1582_v13 = vmax.f32 %v1581_v29, %v1446_v55 }
 0xac9   :  { %p2738_p7 = por %p2737_p6, %p2736_p5 }
 0xacb   :  { %p2739_p8 = pnand %p2738_p7, %p2732_p4 }
 0xae3   :  { %v1526_v24 = vpop.f32.mrb[56].mxu0 }
 0xae4   :  { %v1527_v47 = vadd.f32 %v3570_v9, %v1526_v24  ;;  %v2537_v16 = vpop.f32.mrb[57].mxu0 }
 0xae5   :  { %v1529_v0 = vpop.f32.mrb[58].mxu0 }
 0xae6   :  { %v3663_v28 = vmax.f32 %v1527_v47, 0.0  ;;  %v2538_v22 = vpop.f32.mrb[59].mxu0 }
 0xae8   :  { %v1533_v56 = vpack.c.bf16 %v3663_v28, %v3663_v28 }
 0xaea   :  { %2556 = vmatmul.mubr.bf16.vlgmr.msra.gmra.mrb[56].mxu1 %v1533_v56 }
 0xbbd   :  { %v1568_v25 = vpop.f32.mrb[56].mxu1 }
 0xbbe   :  { %v1569_v46 = vadd.f32 %v2642_v35, %v1568_v25  ;;  %v2557_v48 = vpop.f32.mrb[57].mxu1 }
 0xbbf   :  { %v1571_v15 = vpop.f32.mrb[58].mxu1 }
 0xbc0   :  { %v1574_v17 = vmax.f32 %v1569_v46, 0.0  ;;  %v2558_v18 = vpop.f32.mrb[59].mxu1 }
 0xbc2   :  { %v1583_v9 = vmax.f32 %v1582_v13, %v1574_v17 }
 0xbc4   :  { %v1584_v39 = vsub.f32 %v422_v44, %v1583_v9  ;;  %v1587_v41 = vsub.f32 %v550_v45, %v1583_v9  ;;  %v1590_v32 = vsub.f32 %v678_v30, %v1583_v9  ;;  %v1593_v29 = vsub.f32 %v806_v63, %v1583_v9 }
 0xbc5   :  { %v1596_v31 = vsub.f32 %v934_v11, %v1583_v9  ;;  %v1599_v33 = vsub.f32 %v1062_v23, %v1583_v9  ;;  %v1602_v12 = vsub.f32 %v1190_v36, %v1583_v9  ;;  %v1605_v38 = vsub.f32 %v1318_v4, %v1583_v9 }
 0xbc6   :  { %v1585_v40 = vmul.f32 1.442695, %v1584_v39  ;;  %v1588_v44 = vmul.f32 1.442695, %v1587_v41  ;;  %v1591_v45 = vmul.f32 1.442695, %v1590_v32  ;;  %v1608_v27 = vsub.f32 %v1446_v55, %v1583_v9 }
 0xbc7   :  { %v1594_v30 = vmul.f32 1.442695, %v1593_v29  ;;  %v1611_v6 = vsub.f32 %v1574_v17, %v1583_v9  ;;  %v1597_v59 = vmul.f32 1.442695, %v1596_v31  ;;  %v1600_v63 = vmul.f32 1.442695, %v1599_v33 }
 0xbc8   :  { %2594 = vpow2.f32 %v1585_v40  ;;  %v1603_v5 = vmul.f32 1.442695, %v1602_v12  ;;  %v1606_v11 = vmul.f32 1.442695, %v1605_v38  ;;  %v1609_v20 = vmul.f32 1.442695, %v1608_v27 }
 0xbc9   :  { %2596 = vpow2.f32 %v1588_v44  ;;  %v1612_v36 = vmul.f32 1.442695, %v1611_v6 }
 0xbca   :  { %2598 = vpow2.f32 %v1591_v45 }
 0xbcb   :  { %2600 = vpow2.f32 %v1594_v30 }
 0xbcc   :  { %2602 = vpow2.f32 %v1597_v59 }
 0xbcd   :  { %2604 = vpow2.f32 %v1600_v63 }
 0xbce   :  { %2606 = vpow2.f32 %v1603_v5 }
 0xbcf   :  { %2608 = vpow2.f32 %v1606_v11 }
 0xbd0   :  { %2610 = vpow2.f32 %v1609_v20 }
 0xbd1   :  { %2612 = vpow2.f32 %v1612_v36 }
 0xbd2   :  { %v2595_v23 = vpop.eup %2594 }
 0xbd3   :  { %v2597_v10 = vpop.eup %2596  ;;  %v1623_v26 = vmul.f32 %v2595_v23, %v3028_v42 }
 0xbd4   :  { %v2599_v4 = vpop.eup %2598  ;;  %v1614_v19 = vadd.f32 %v2597_v10, %v2595_v23  ;;  %v1624_v21 = vmul.f32 %v2597_v10, %v3090_v62 }
 0xbd5   :  { %v2601_v57 = vpop.eup %2600  ;;  %v1626_v2 = vmul.f32 %v2599_v4, %v3170_v52 }
 0xbd6   :  { %v1615_v58 = vadd.f32 %v2599_v4, %v1614_v19  ;;  %v1625_v60 = vadd.f32 %v1624_v21, %v1623_v26  ;;  %v2603_v61 = vpop.eup %2602  ;;  %v1628_v49 = vmul.f32 %v2601_v57, %v3239_v43 }
 0xbd7   :  { %v2605_v7 = vpop.eup %2604  ;;  %v1630_v42 = vmul.f32 %v2603_v61, %v3308_v34 }
 0xbd8   :  { %v1616_v3 = vadd.f32 %v2601_v57, %v1615_v58  ;;  %v1627_v37 = vadd.f32 %v1626_v2, %v1625_v60  ;;  %v2607_v55 = vpop.eup %2606  ;;  %v1632_v13 = vmul.f32 %v2605_v7, %v3377_v54 }
 0xbd9   :  { %v2609_v24 = vpop.eup %2608  ;;  %v1634_v52 = vmul.f32 %v2607_v55, %v3470_v1 }
 0xbda   :  { %v1617_v50 = vadd.f32 %v2603_v61, %v1616_v3  ;;  %v1629_v51 = vadd.f32 %v1628_v49, %v1627_v37  ;;  %v2611_v0 = vpop.eup %2610  ;;  %v1636_v43 = vmul.f32 %v2609_v24, %v3573_v53 }
 0xbdb   :  { %v2613_v25 = vpop.eup %2612  ;;  %v1638_v34 = vmul.f32 %v2611_v0, %v3639_v8 }
 0xbdc   :  { %v1618_v14 = vadd.f32 %v2605_v7, %v1617_v50  ;;  %v1631_v62 = vadd.f32 %v1630_v42, %v1629_v51  ;;  %v1640_v17 = vmul.f32 %v2613_v25, %v3663_v28 }
 0xbde   :  { %v1619_v47 = vadd.f32 %v2607_v55, %v1618_v14  ;;  %v1633_v16 = vadd.f32 %v1632_v13, %v1631_v62 }
 0xbe0   :  { %v1620_v22 = vadd.f32 %v2609_v24, %v1619_v47  ;;  %v1635_v56 = vadd.f32 %v1634_v52, %v1633_v16 }
 0xbe2   :  { %v1621_v35 = vadd.f32 %v2611_v0, %v1620_v22  ;;  %v1637_v46 = vadd.f32 %v1636_v43, %v1635_v56 }
 0xbe4   :  { %v1622_v48 = vadd.f32 %v2613_v25, %v1621_v35  ;;  %v1639_v15 = vadd.f32 %v1638_v34, %v1637_v46 }
 0xbe6   :  { %v1641_v54 = vadd.f32 %v1640_v17, %v1639_v15  ;;  %2614 = vrcp.f32 %v1622_v48 }
 0xbf0   :  { %v2615_v18 = vpop.eup %2614 }
 0xbf1   :  { %v1643_v1 = vmul.f32 %v2615_v18, %v1641_v54 }
 0xbf3   :  { %1644 = vst [vmem:[#allocation10] sm:$0xff] %v1643_v1 }
 0xbf4   :  { %2742 = shalt.err (!%p2739_p8)
}
 0xbf5   :  { %s2743_s0 = scalar_lea.hbm %s3715_s7, 128 }
 0xbf6   :  { %p2744_p9 = scmp.ne.s32.totalorder %s3715_s7, %s2743_s0  ;;  %p2747_p10 = scmp.lt.u32.totalorder %s2743_s0, %s3715_s7 }
 0xbf8   :  { %p2749_p11 = pnand %p2747_p10, %p2744_p9 }
 0xbfa   :  { %2752 = shalt.err (!%p2749_p11)
}
 0xbfb   :  { %1654 = dma.vmem_to_hbm [thread:$0]  %s1652_s14, 128, %s3715_s7, [#allocation4]  }
 0xbfc   :  { %2759 = dma.done.wait [#allocation4], 128  }
 0xbfd   :  { %2760 = vsyncadd [#allocation4], 4294967168 }
 0xbfe   :  { %1658 = vsyncpa [#allocation3], 1 }
 0xbff   :  { %1659 = vsyncpa [#allocation6], 1 }
 0xc00   :  { %1660 = vsyncpa [#allocation9], 1 }
 0xc01   :  { %1661 = vsyncpa [#allocation4], 1 }

</bundles_post_ra>
